<compile_context>
chip_gen: v7x
topology: tpu7x:2x2x1
jax: 0.10.0
libtpu: 0.0.40
codegen_flags: <defaults>
</compile_context>

<pallas_src>
import jax
import jax.numpy as jnp
from jax.experimental import pallas as pl
from jax.experimental.pallas import tpu as pltpu


# ----------------------------------------------------------------------------
# Kernel
# ----------------------------------------------------------------------------
def make_vae_kernel(n_enc_layers: int, n_dec_layers: int, n_input: int, rank: int):
    """Kernel body for a fixed number of encode / decode layers."""

    def kernel(*refs):
        idx = 0
        x_ref = refs[idx]; idx += 1          # [TB, n_input]  f32
        u_ref = refs[idx]; idx += 1          # [TB, rank]     f32 uniform samples

        enc_params = []
        for _ in range(n_enc_layers):
            enc_params.append((refs[idx], refs[idx + 1]))  # (W [in,out] bf16, b [1,out] f32)
            idx += 2

        wl_ref, bl_ref = refs[idx], refs[idx + 1]; idx += 2   # L head
        wk_ref, bk_ref = refs[idx], refs[idx + 1]; idx += 2   # K head
        wh_ref = refs[idx]; idx += 1                          # H (no bias)

        dec_ws = []
        for _ in range(n_dec_layers):
            dec_ws.append(refs[idx]); idx += 1                # decode layers (no bias)

        out_ref = refs[idx]                  # [TB, n_input + 3*rank] f32 slab

        # ---- encode: bf16 MXU matmuls, f32 accumulate / bias / ReLU ---------
        h = x_ref[...].astype(jnp.bfloat16)
        for w_ref, b_ref in enc_params:
            a = jnp.dot(h, w_ref[...], preferred_element_type=jnp.float32) + b_ref[...]
            h = jnp.maximum(a, 0.0).astype(jnp.bfloat16)      # ReLU

        loglamba = jnp.dot(h, wl_ref[...], preferred_element_type=jnp.float32) + bl_ref[...]
        logkappa = jnp.dot(h, wk_ref[...], preferred_element_type=jnp.float32) + bk_ref[...]

        # ---- reparameterize (Weibull sampling), algebraically fused:
        #   z = exp(loglamba) * (-log u)**(1/exp(logkappa))
        #     = exp(loglamba + exp(-logkappa) * log(-log u))
        u = jnp.maximum(u_ref[...], jnp.float32(1e-30))       # guard u == 0 -> inf
        log_neg_log_u = jnp.log(-jnp.log(u))
        z = jnp.exp(loglamba + jnp.exp(-logkappa) * log_neg_log_u)

        # ---- decode (no biases) ---------------------------------------------
        d = jnp.dot(z.astype(jnp.bfloat16), wh_ref[...],
                    preferred_element_type=jnp.float32)
        for w_ref in dec_ws:
            d = jnp.dot(d.astype(jnp.bfloat16), w_ref[...],
                        preferred_element_type=jnp.float32)

        # single output slab -> one writeback stream per batch tile
        out_ref[:, 0:n_input] = d
        out_ref[:, n_input:n_input + rank] = loglamba
        out_ref[:, n_input + rank:n_input + 2 * rank] = logkappa
        out_ref[:, n_input + 2 * rank:n_input + 3 * rank] = z

    return kernel


def _pick_batch_tile(B: int) -> int:
    """Batch tile: 128 rows feeds the MXU on all generations; keep >=2 grid
    steps when possible so the pipeline actually overlaps DMA with compute."""
    if B >= 256 and B % 128 == 0:
        return 128
    for tb in (128, 64, 32, 16, 8):
        if B >= tb and B % tb == 0:
            return tb
    return B  # fallback: single full-batch block (full-extent dims are legal)


# ----------------------------------------------------------------------------
# Wrapper
# ----------------------------------------------------------------------------
def vae_forward(x, samples, params, n_enc_layers, n_dec_layers):
    """params: flat list in kernel order (weights pre-transposed [in,out] bf16,
    biases [1,out] f32)."""
    B, n_input = x.shape
    rank = samples.shape[1]
    tb = _pick_batch_tile(B)
    grid = (B // tb,)
    W = n_input + 3 * rank

    batch_map = lambda i: (i, 0)   # activations / outputs: tile over batch
    const_map = lambda i: (0, 0)   # weights / biases: VMEM-resident, DMA'd once

    in_specs = [pl.BlockSpec((tb, n_input), batch_map),
                pl.BlockSpec((tb, rank), batch_map)]
    for p in params:
        in_specs.append(pl.BlockSpec(p.shape, const_map))

    out_spec = pl.BlockSpec((tb, W), batch_map)
    out_shape = jax.ShapeDtypeStruct((B, W), jnp.float32)

    # advisory cost estimate for XLA scheduling around the custom call
    flops = 2 * B * sum(int(p.shape[0]) * int(p.shape[1])
                        for p in params if p.shape[0] > 1)
    transcendentals = 4 * B * rank
    bytes_accessed = (x.size * x.dtype.itemsize
                      + samples.size * samples.dtype.itemsize
                      + sum(p.size * p.dtype.itemsize for p in params)
                      + B * W * 4)

    kernel = make_vae_kernel(n_enc_layers, n_dec_layers, n_input, rank)

    out = pl.pallas_call(
        kernel,
        grid=grid,
        in_specs=in_specs,
        out_specs=out_spec,
        out_shape=out_shape,
        compiler_params=pltpu.CompilerParams(
            dimension_semantics=("parallel",)),   # batch tiles independent
        cost_estimate=pl.CostEstimate(
            flops=flops, transcendentals=transcendentals,
            bytes_accessed=bytes_accessed),
    )(x, samples, *params)

    recon = out[:, :n_input]
    loglamba = out[:, n_input:n_input + rank]
    logkappa = out[:, n_input + rank:n_input + 2 * rank]
    z = out[:, n_input + 2 * rank:]
    return recon, loglamba, logkappa, z


# ----------------------------------------------------------------------------
# Deterministic parameter construction (PyTorch nn.Linear default init:
# U(-1/sqrt(fan_in), 1/sqrt(fan_in)) for weight and bias). Weights stored
# pre-transposed [in, out] in bf16; biases [1, out] in f32.
# ----------------------------------------------------------------------------
def init_linear(key, fan_in, fan_out, bias=True):
    kw, kb = jax.random.split(key)
    bound = 1.0 / jnp.sqrt(float(fan_in))
    w = jax.random.uniform(kw, (fan_in, fan_out), jnp.float32,
                           -bound, bound).astype(jnp.bfloat16)
    if bias:
        b = jax.random.uniform(kb, (1, fan_out), jnp.float32, -bound, bound)
        return w, b
    return (w,)


def build_params(key, n_input, encode, rank, decode):
    enc_dims = [n_input] + list(encode)
    dec_dims = list(decode) + [n_input]

    params = []
    keys = jax.random.split(key, len(enc_dims) + len(dec_dims) + 2)
    ki = 0

    # encode layers (with bias)
    for i in range(len(enc_dims) - 1):
        w, b = init_linear(keys[ki], enc_dims[i], enc_dims[i + 1], bias=True); ki += 1
        params += [w, b]
    # L and K heads (with bias)
    wl, bl = init_linear(keys[ki], enc_dims[-1], rank, bias=True); ki += 1
    wk, bk = init_linear(keys[ki], enc_dims[-1], rank, bias=True); ki += 1
    params += [wl, bl, wk, bk]
    # H (no bias)
    (wh,) = init_linear(keys[ki], rank, dec_dims[0], bias=False); ki += 1
    params += [wh]
    # decode layers (no bias)
    for i in range(len(dec_dims) - 1):
        (wd,) = init_linear(keys[ki], dec_dims[i], dec_dims[i + 1], bias=False); ki += 1
        params += [wd]

    return params, len(enc_dims) - 1, len(dec_dims) - 1


# ----------------------------------------------------------------------------
# Pure-JAX reference (PyTorch-form reparameterization) for sanity checking.
# Uses the same bf16 matmul inputs / f32 accumulation as the kernel.
# ----------------------------------------------------------------------------
def vae_reference(x, samples, params, n_enc, n_dec):
    idx = 0
    h = x.astype(jnp.bfloat16)
    for _ in range(n_enc):
        w, b = params[idx], params[idx + 1]; idx += 2
        a = jnp.dot(h, w, preferred_element_type=jnp.float32) + b
        h = jnp.maximum(a, 0.0).astype(jnp.bfloat16)
    wl, bl, wk, bk = params[idx:idx + 4]; idx += 4
    loglamba = jnp.dot(h, wl, preferred_element_type=jnp.float32) + bl
    logkappa = jnp.dot(h, wk, preferred_element_type=jnp.float32) + bk
    lam, kap = jnp.exp(loglamba), jnp.exp(logkappa)
    u = jnp.maximum(samples, jnp.float32(1e-30))
    z = lam * jnp.power(-jnp.log(u), 1.0 / kap)
    wh = params[idx]; idx += 1
    d = jnp.dot(z.astype(jnp.bfloat16), wh, preferred_element_type=jnp.float32)
    for _ in range(n_dec):
        d = jnp.dot(d.astype(jnp.bfloat16), params[idx],
                    preferred_element_type=jnp.float32); idx += 1
    return d, loglamba, logkappa, z


if __name__ == "__main__":
    # Shapes consistent with VAE(n_input, encode, rank, decode); batch large
    # enough to exercise the batch-tiled pipeline (grid=(2,), TB=128).
    n_input, encode, rank, decode = 16, [32, 16], 8, [16]
    batch = 256

    root = jax.random.PRNGKey(0)
    k_x, k_u, k_p = jax.random.split(root, 3)

    x = jax.random.normal(k_x, (batch, n_input), jnp.float32)
    # torch.rand_like -> U[0,1); the forward consumes -log(u) (u==0 is clamped)
    samples = jax.random.uniform(k_u, (batch, rank), jnp.float32)

    params, n_enc, n_dec = build_params(k_p, n_input, encode, rank, decode)

    recon, loglamba, logkappa, z = vae_forward(x, samples, params, n_enc, n_dec)
    jax.block_until_ready((recon, loglamba, logkappa, z))

    # correctness check vs pure-JAX reference (tolerances account for the bf16
    # matmul inputs and the fused-vs-pow reparameterization)
    r_ref, ll_ref, lk_ref, z_ref = vae_reference(x, samples, params, n_enc, n_dec)

    assert jnp.allclose(loglamba, ll_ref, atol=1e-4, rtol=1e-4)
    assert jnp.allclose(logkappa, lk_ref, atol=1e-4, rtol=1e-4)
    assert jnp.allclose(z, z_ref, rtol=2e-3, atol=1e-6)
    recon_scale = max(float(jnp.max(jnp.abs(r_ref))), 1.0)
    assert jnp.allclose(recon, r_ref, rtol=2e-2, atol=2e-2 * recon_scale)

    print("KERNEL_OK")
</pallas_src>

<mosaic_0001>
module attributes {stable_mosaic.version = 11 : i64} {
  func.func @kernel(%arg0: i32, %arg1: memref<128x16xf32, #tpu.memory_space<vmem>>, %arg2: memref<128x8xf32, #tpu.memory_space<vmem>>, %arg3: memref<16x32xbf16, #tpu.memory_space<vmem>>, %arg4: memref<1x32xf32, #tpu.memory_space<vmem>>, %arg5: memref<32x16xbf16, #tpu.memory_space<vmem>>, %arg6: memref<1x16xf32, #tpu.memory_space<vmem>>, %arg7: memref<16x8xbf16, #tpu.memory_space<vmem>>, %arg8: memref<1x8xf32, #tpu.memory_space<vmem>>, %arg9: memref<16x8xbf16, #tpu.memory_space<vmem>>, %arg10: memref<1x8xf32, #tpu.memory_space<vmem>>, %arg11: memref<8x16xbf16, #tpu.memory_space<vmem>>, %arg12: memref<16x16xbf16, #tpu.memory_space<vmem>>, %arg13: memref<128x40xf32, #tpu.memory_space<vmem>>) attributes {dimension_semantics = [#tpu.dimension_semantics<parallel>], iteration_bounds = array<i64: 2>, scalar_prefetch = 0 : i64, scratch_operands = 0 : i64, tpu.core_type = #tpu.core_type<tc>, window_params = [{transform_indices = @transform_0, window_bounds = array<i64: 128, 16>}, {transform_indices = @transform_1, window_bounds = array<i64: 128, 8>}, {pipeline_mode = #tpu.pipeline_mode<synchronous>, transform_indices = @transform_2, window_bounds = array<i64: 16, 32>}, {pipeline_mode = #tpu.pipeline_mode<synchronous>, transform_indices = @transform_3, window_bounds = array<i64: 1, 32>}, {pipeline_mode = #tpu.pipeline_mode<synchronous>, transform_indices = @transform_4, window_bounds = array<i64: 32, 16>}, {pipeline_mode = #tpu.pipeline_mode<synchronous>, transform_indices = @transform_5, window_bounds = array<i64: 1, 16>}, {pipeline_mode = #tpu.pipeline_mode<synchronous>, transform_indices = @transform_6, window_bounds = array<i64: 16, 8>}, {pipeline_mode = #tpu.pipeline_mode<synchronous>, transform_indices = @transform_7, window_bounds = array<i64: 1, 8>}, {pipeline_mode = #tpu.pipeline_mode<synchronous>, transform_indices = @transform_8, window_bounds = array<i64: 16, 8>}, {pipeline_mode = #tpu.pipeline_mode<synchronous>, transform_indices = @transform_9, window_bounds = array<i64: 1, 8>}, {pipeline_mode = #tpu.pipeline_mode<synchronous>, transform_indices = @transform_10, window_bounds = array<i64: 8, 16>}, {pipeline_mode = #tpu.pipeline_mode<synchronous>, transform_indices = @transform_11, window_bounds = array<i64: 16, 16>}, {transform_indices = @transform_12, window_bounds = array<i64: 128, 40>}]} {
    %c0 = arith.constant 0 : index
    %c0_0 = arith.constant 0 : index
    %0 = vector.load %arg1[%c0, %c0_0] : memref<128x16xf32, #tpu.memory_space<vmem>>, vector<128x16xf32>
    %1 = arith.truncf %0 : vector<128x16xf32> to vector<128x16xbf16>
    %c0_1 = arith.constant 0 : index
    %c0_2 = arith.constant 0 : index
    %2 = vector.load %arg3[%c0_1, %c0_2] : memref<16x32xbf16, #tpu.memory_space<vmem>>, vector<16x32xbf16>
    %cst = arith.constant dense<0.000000e+00> : vector<128x32xf32>
    %3 = tpu.matmul %1, %2, %cst {dimension_numbers = #tpu.dot_dimension_numbers<[1], [0], [0], [1], [0, 0, 1, 1], [], []>} : vector<128x16xbf16>, vector<16x32xbf16>, vector<128x32xf32> -> vector<128x32xf32>
    %c0_3 = arith.constant 0 : index
    %c0_4 = arith.constant 0 : index
    %4 = vector.load %arg4[%c0_3, %c0_4] : memref<1x32xf32, #tpu.memory_space<vmem>>, vector<1x32xf32>
    %5 = vector.broadcast %4 : vector<1x32xf32> to vector<128x32xf32>
    %6 = arith.addf %3, %5 : vector<128x32xf32>
    %cst_5 = arith.constant 0.000000e+00 : f32
    %7 = vector.broadcast %cst_5 : f32 to vector<128x32xf32>
    %8 = arith.maximumf %6, %7 : vector<128x32xf32>
    %9 = arith.truncf %8 : vector<128x32xf32> to vector<128x32xbf16>
    %c0_6 = arith.constant 0 : index
    %c0_7 = arith.constant 0 : index
    %10 = vector.load %arg5[%c0_6, %c0_7] : memref<32x16xbf16, #tpu.memory_space<vmem>>, vector<32x16xbf16>
    %cst_8 = arith.constant dense<0.000000e+00> : vector<128x16xf32>
    %11 = tpu.matmul %9, %10, %cst_8 {dimension_numbers = #tpu.dot_dimension_numbers<[1], [0], [0], [1], [0, 0, 1, 1], [], []>} : vector<128x32xbf16>, vector<32x16xbf16>, vector<128x16xf32> -> vector<128x16xf32>
    %c0_9 = arith.constant 0 : index
    %c0_10 = arith.constant 0 : index
    %12 = vector.load %arg6[%c0_9, %c0_10] : memref<1x16xf32, #tpu.memory_space<vmem>>, vector<1x16xf32>
    %13 = vector.broadcast %12 : vector<1x16xf32> to vector<128x16xf32>
    %14 = arith.addf %11, %13 : vector<128x16xf32>
    %cst_11 = arith.constant 0.000000e+00 : f32
    %15 = vector.broadcast %cst_11 : f32 to vector<128x16xf32>
    %16 = arith.maximumf %14, %15 : vector<128x16xf32>
    %17 = arith.truncf %16 : vector<128x16xf32> to vector<128x16xbf16>
    %c0_12 = arith.constant 0 : index
    %c0_13 = arith.constant 0 : index
    %18 = vector.load %arg7[%c0_12, %c0_13] : memref<16x8xbf16, #tpu.memory_space<vmem>>, vector<16x8xbf16>
    %cst_14 = arith.constant dense<0.000000e+00> : vector<128x8xf32>
    %19 = tpu.matmul %17, %18, %cst_14 {dimension_numbers = #tpu.dot_dimension_numbers<[1], [0], [0], [1], [0, 0, 1, 1], [], []>} : vector<128x16xbf16>, vector<16x8xbf16>, vector<128x8xf32> -> vector<128x8xf32>
    %c0_15 = arith.constant 0 : index
    %c0_16 = arith.constant 0 : index
    %20 = vector.load %arg8[%c0_15, %c0_16] : memref<1x8xf32, #tpu.memory_space<vmem>>, vector<1x8xf32>
    %21 = vector.broadcast %20 : vector<1x8xf32> to vector<128x8xf32>
    %22 = arith.addf %19, %21 : vector<128x8xf32>
    %c0_17 = arith.constant 0 : index
    %c0_18 = arith.constant 0 : index
    %23 = vector.load %arg9[%c0_17, %c0_18] : memref<16x8xbf16, #tpu.memory_space<vmem>>, vector<16x8xbf16>
    %cst_19 = arith.constant dense<0.000000e+00> : vector<128x8xf32>
    %24 = tpu.matmul %17, %23, %cst_19 {dimension_numbers = #tpu.dot_dimension_numbers<[1], [0], [0], [1], [0, 0, 1, 1], [], []>} : vector<128x16xbf16>, vector<16x8xbf16>, vector<128x8xf32> -> vector<128x8xf32>
    %c0_20 = arith.constant 0 : index
    %c0_21 = arith.constant 0 : index
    %25 = vector.load %arg10[%c0_20, %c0_21] : memref<1x8xf32, #tpu.memory_space<vmem>>, vector<1x8xf32>
    %26 = vector.broadcast %25 : vector<1x8xf32> to vector<128x8xf32>
    %27 = arith.addf %24, %26 : vector<128x8xf32>
    %c0_22 = arith.constant 0 : index
    %c0_23 = arith.constant 0 : index
    %28 = vector.load %arg2[%c0_22, %c0_23] : memref<128x8xf32, #tpu.memory_space<vmem>>, vector<128x8xf32>
    %cst_24 = arith.constant 1.000000e-30 : f32
    %29 = vector.broadcast %cst_24 : f32 to vector<128x8xf32>
    %30 = arith.maximumf %28, %29 : vector<128x8xf32>
    %31 = math.log %30 : vector<128x8xf32>
    %cst_25 = arith.constant 0.000000e+00 : f32
    %32 = vector.broadcast %cst_25 : f32 to vector<128x8xf32>
    %33 = arith.subf %32, %31 : vector<128x8xf32>
    %34 = math.log %33 : vector<128x8xf32>
    %cst_26 = arith.constant 0.000000e+00 : f32
    %35 = vector.broadcast %cst_26 : f32 to vector<128x8xf32>
    %36 = arith.subf %35, %27 : vector<128x8xf32>
    %37 = math.exp %36 : vector<128x8xf32>
    %38 = arith.mulf %37, %34 : vector<128x8xf32>
    %39 = arith.addf %22, %38 : vector<128x8xf32>
    %40 = math.exp %39 : vector<128x8xf32>
    %41 = arith.truncf %40 : vector<128x8xf32> to vector<128x8xbf16>
    %c0_27 = arith.constant 0 : index
    %c0_28 = arith.constant 0 : index
    %42 = vector.load %arg11[%c0_27, %c0_28] : memref<8x16xbf16, #tpu.memory_space<vmem>>, vector<8x16xbf16>
    %cst_29 = arith.constant dense<0.000000e+00> : vector<128x16xf32>
    %43 = tpu.matmul %41, %42, %cst_29 {dimension_numbers = #tpu.dot_dimension_numbers<[1], [0], [0], [1], [0, 0, 1, 1], [], []>} : vector<128x8xbf16>, vector<8x16xbf16>, vector<128x16xf32> -> vector<128x16xf32>
    %44 = arith.truncf %43 : vector<128x16xf32> to vector<128x16xbf16>
    %c0_30 = arith.constant 0 : index
    %c0_31 = arith.constant 0 : index
    %45 = vector.load %arg12[%c0_30, %c0_31] : memref<16x16xbf16, #tpu.memory_space<vmem>>, vector<16x16xbf16>
    %cst_32 = arith.constant dense<0.000000e+00> : vector<128x16xf32>
    %46 = tpu.matmul %44, %45, %cst_32 {dimension_numbers = #tpu.dot_dimension_numbers<[1], [0], [0], [1], [0, 0, 1, 1], [], []>} : vector<128x16xbf16>, vector<16x16xbf16>, vector<128x16xf32> -> vector<128x16xf32>
    %c0_33 = arith.constant 0 : index
    %c0_34 = arith.constant 0 : index
    %47 = vector.load %arg13[%c0_33, %c0_34] : memref<128x40xf32, #tpu.memory_space<vmem>>, vector<128x16xf32>
    tpu.vector_store %arg13[%c0_33, %c0_34], %46 {strides = array<i32>} : memref<128x40xf32, #tpu.memory_space<vmem>>, vector<128x16xf32>,
    %c0_35 = arith.constant 0 : index
    %c16 = arith.constant 16 : index
    %48 = vector.load %arg13[%c0_35, %c16] : memref<128x40xf32, #tpu.memory_space<vmem>>, vector<128x8xf32>
    tpu.vector_store %arg13[%c0_35, %c16], %22 {strides = array<i32>} : memref<128x40xf32, #tpu.memory_space<vmem>>, vector<128x8xf32>,
    %c0_36 = arith.constant 0 : index
    %c24 = arith.constant 24 : index
    %49 = vector.load %arg13[%c0_36, %c24] : memref<128x40xf32, #tpu.memory_space<vmem>>, vector<128x8xf32>
    tpu.vector_store %arg13[%c0_36, %c24], %27 {strides = array<i32>} : memref<128x40xf32, #tpu.memory_space<vmem>>, vector<128x8xf32>,
    %c0_37 = arith.constant 0 : index
    %c32 = arith.constant 32 : index
    %50 = vector.load %arg13[%c0_37, %c32] : memref<128x40xf32, #tpu.memory_space<vmem>>, vector<128x8xf32>
    tpu.vector_store %arg13[%c0_37, %c32], %40 {strides = array<i32>} : memref<128x40xf32, #tpu.memory_space<vmem>>, vector<128x8xf32>,
    return
  }
  func.func @transform_0(%arg0: i32) -> (i32, i32) {
    %c0_i32 = arith.constant 0 : i32
    %c0_i32_0 = arith.constant 0 : i32
    return %arg0, %c0_i32 : i32, i32
  }
  func.func @transform_1(%arg0: i32) -> (i32, i32) {
    %c0_i32 = arith.constant 0 : i32
    %c0_i32_0 = arith.constant 0 : i32
    return %arg0, %c0_i32 : i32, i32
  }
  func.func @transform_2(%arg0: i32) -> (i32, i32) {
    %c0_i32 = arith.constant 0 : i32
    %c0_i32_0 = arith.constant 0 : i32
    %c0_i32_1 = arith.constant 0 : i32
    return %c0_i32, %c0_i32_0 : i32, i32
  }
  func.func @transform_3(%arg0: i32) -> (i32, i32) {
    %c0_i32 = arith.constant 0 : i32
    %c0_i32_0 = arith.constant 0 : i32
    %c0_i32_1 = arith.constant 0 : i32
    return %c0_i32, %c0_i32_0 : i32, i32
  }
  func.func @transform_4(%arg0: i32) -> (i32, i32) {
    %c0_i32 = arith.constant 0 : i32
    %c0_i32_0 = arith.constant 0 : i32
    %c0_i32_1 = arith.constant 0 : i32
    return %c0_i32, %c0_i32_0 : i32, i32
  }
  func.func @transform_5(%arg0: i32) -> (i32, i32) {
    %c0_i32 = arith.constant 0 : i32
    %c0_i32_0 = arith.constant 0 : i32
    %c0_i32_1 = arith.constant 0 : i32
    return %c0_i32, %c0_i32_0 : i32, i32
  }
  func.func @transform_6(%arg0: i32) -> (i32, i32) {
    %c0_i32 = arith.constant 0 : i32
    %c0_i32_0 = arith.constant 0 : i32
    %c0_i32_1 = arith.constant 0 : i32
    return %c0_i32, %c0_i32_0 : i32, i32
  }
  func.func @transform_7(%arg0: i32) -> (i32, i32) {
    %c0_i32 = arith.constant 0 : i32
    %c0_i32_0 = arith.constant 0 : i32
    %c0_i32_1 = arith.constant 0 : i32
    return %c0_i32, %c0_i32_0 : i32, i32
  }
  func.func @transform_8(%arg0: i32) -> (i32, i32) {
    %c0_i32 = arith.constant 0 : i32
    %c0_i32_0 = arith.constant 0 : i32
    %c0_i32_1 = arith.constant 0 : i32
    return %c0_i32, %c0_i32_0 : i32, i32
  }
  func.func @transform_9(%arg0: i32) -> (i32, i32) {
    %c0_i32 = arith.constant 0 : i32
    %c0_i32_0 = arith.constant 0 : i32
    %c0_i32_1 = arith.constant 0 : i32
    return %c0_i32, %c0_i32_0 : i32, i32
  }
  func.func @transform_10(%arg0: i32) -> (i32, i32) {
    %c0_i32 = arith.constant 0 : i32
    %c0_i32_0 = arith.constant 0 : i32
    %c0_i32_1 = arith.constant 0 : i32
    return %c0_i32, %c0_i32_0 : i32, i32
  }
  func.func @transform_11(%arg0: i32) -> (i32, i32) {
    %c0_i32 = arith.constant 0 : i32
    %c0_i32_0 = arith.constant 0 : i32
    %c0_i32_1 = arith.constant 0 : i32
    return %c0_i32, %c0_i32_0 : i32, i32
  }
  func.func @transform_12(%arg0: i32) -> (i32, i32) {
    %c0_i32 = arith.constant 0 : i32
    %c0_i32_0 = arith.constant 0 : i32
    return %arg0, %c0_i32 : i32, i32
  }
}

</mosaic_0001>

<bundles_post_ra>
// kernel: tpu_custom_call.1
= control target key start
LH: loop header
LB: loop body
LE: loop exit
PB: predicated region body
PF: predicated region fallthrough
CT: control target
= control target key end

     0   :  { %s2323_s21 = smov 0   ;;  %s2905_s0 = inlined_call_operand.vmem [shape: f32[256,16], index: 0, kind: input, shape index: {}]   ;;  %s2906_s1 = inlined_call_operand.vmem [shape: f32[256,8], index: 1, kind: input, shape index: {}]   ;;  %s2907_s2 = inlined_call_operand.vmem [shape: bf16[16,32], index: 2, kind: input, shape index: {}]   ;;  %s2908_s3 = inlined_call_operand.vmem [shape: f32[1,32], index: 3, kind: input, shape index: {}]   ;;  %s2909_s4 = inlined_call_operand.vmem [shape: bf16[32,16], index: 4, kind: input, shape index: {}]   ;;  %s2910_s5 = inlined_call_operand.vmem [shape: f32[1,16], index: 5, kind: input, shape index: {}]   ;;  %s2911_s6 = inlined_call_operand.vmem [shape: bf16[16,8], index: 6, kind: input, shape index: {}]   ;;  %s2912_s7 = inlined_call_operand.vmem [shape: f32[1,8], index: 7, kind: input, shape index: {}]   ;;  %s2913_s8 = inlined_call_operand.vmem [shape: bf16[16,8], index: 8, kind: input, shape index: {}]   ;;  %s2914_s9 = inlined_call_operand.vmem [shape: f32[1,8], index: 9, kind: input, shape index: {}]   ;;  %s2915_s10 = inlined_call_operand.vmem [shape: bf16[8,16], index: 10, kind: input, shape index: {}]   ;;  %s2916_s11 = inlined_call_operand.vmem [shape: bf16[16,16], index: 11, kind: input, shape index: {}]   ;;  %s2917_s12 = inlined_call_operand.vmem [shape: f32[256,40], index: 12, kind: output, shape index: {}]  }
   0x1 LB: > { %s1865_s22 = sadd.s32 4294967295, %s2253_s21   ;;  %p1869_p0 = scmp.ge.s32.totalorder %s2253_s21, 1  ;;  %s2253_s21 = sphi %s2323_s21, %s22_s21  }
   0x2   : > { %p374_p1 = scmp.lt.s32.totalorder %s2253_s21, 3 }
   0x4   : > { %p375_p2 = pnand %p1869_p0, %p374_p1 }
   0x5   : > { %v2113_v0 = vld [vmem:[%s2907_s2] sm:$0xff] (!%p375_p2)   ;;  %s1870_s25 = sshll.u32 (!%p375_p2), %s1865_s22, 4  ;;  %vm479_vm0 = vcmask (!%p375_p2), 130048   ;;  %v2115_v26 = vld [vmem:[%s2909_s4 + $0x8] sm:$0xff] (!%p375_p2)   ;;  %vm648_vm1 = vcmask (!%p375_p2), 261120   ;;  %vm1300_vm2 = vcmask (!%p375_p2), 1043456  }
   0x6   : > { %378 = sbr.rel (%p375_p2) target bundleno = 1187 (0x4a3), region = 68  ;;  %p422_p3 = scmp.lt.s32.totalorder (!%p375_p2), %s1870_s25, 31  ;;  %1991 = vmatprep.subr.bf16.mxu0 (!%p375_p2), %v2113_v0  ;;  %v2114_v25 = vld [vmem:[%s2909_s4] sm:$0xff] (!%p375_p2)   ;;  %vm1275_vm3 = vcmask (!%p375_p2), 64512   ;;  %vm1618_vm4 = vcmask (!%p375_p2), 195712   ;;  %vm1699_vm5 = vcmask (!%p375_p2), 261312  }
   0x7   : > { %1992 = vmatpush3.bf16.msra.mxu0 (!%p375_p2), %v2113_v0  ;;  %2009 = vmatprep.subr.bf16.mxu1 (!%p375_p2), %v2114_v25  ;;  %v2116_v27 = vld [vmem:[%s2913_s8] sm:$0xff] (!%p375_p2)   ;;  %s2255_s17 = smov (!%p375_p2), 24   ;;  %s2256_s18 = smov (!%p375_p2), 16   ;;  %vm1780_vm6 = vcmask (!%p375_p2), 326912  }
   0x8   : > { %2010 = vmatpush3.bf16.msra.mxu1 (!%p375_p2), %v2114_v25  ;;  %v2117_v28 = vld [vmem:[%s2911_s6] sm:$0xff] (!%p375_p2)   ;;  %s2257_s19 = smov (!%p375_p2), 32  }
   0x9   : > { %2011 = vmatprep.subr.bf16.mxu1 (!%p375_p2), %v2115_v26  ;;  %2029 = vmatprep.subr.bf16.mxu0 (!%p375_p2), %v2117_v28  ;;  %v1876_v29 = vld [vmem:[%s2908_s3] ss:$0 sm:$0xff] (!%p375_p2) }
   0xc   : > { %2012 = vmatpush3.bf16.msra.mxu1 (!%p375_p2), %v2115_v26 }
   0xd   : > { %s2919_s25 = smov (!%p422_p3, %s1870_s25), 31  ;;  %2047 = vmatprep.subr.bf16.mxu1 %v2116_v27 }
   0xe   : > { %s2334_s26 = sshll.u32 %s2919_s25, 3 }
   0xf   : > { %s2340_s29 = scalar_lea.vmem %s2905_s0, %s2334_s26  ;;  %s2415_s30 = scalar_lea.vmem %s2906_s1, %s2334_s26 }
  0x10   : > { %v440_v1 = vld [vmem:[%s2340_s29] sm:$0xff]  ;;  %v441_v2 = vld [vmem:[%s2340_s29 + $0x8] sm:$0xff]  ;;  %v442_v3 = vld [vmem:[%s2340_s29 + $0x10] sm:$0xff]  ;;  %s2752_s25 = scalar_lea.vmem %s2917_s12, %s2334_s26 }
  0x11   : > { %v456_v4 = vpack.c.bf16 %v441_v2, %v440_v1  ;;  %v443_v5 = vld [vmem:[%s2340_s29 + $0x18] sm:$0xff]  ;;  %v444_v6 = vld [vmem:[%s2340_s29 + $0x20] sm:$0xff]  ;;  %v445_v7 = vld [vmem:[%s2340_s29 + $0x28] sm:$0xff] }
  0x12   : > { %v457_v8 = vpack.c.bf16 %v443_v5, %v442_v3  ;;  %v458_v9 = vpack.c.bf16 %v445_v7, %v444_v6  ;;  %v446_v10 = vld [vmem:[%s2340_s29 + $0x30] sm:$0xff]  ;;  %v447_v11 = vld [vmem:[%s2340_s29 + $0x38] sm:$0xff]  ;;  %v448_v12 = vld [vmem:[%s2340_s29 + $0x40] sm:$0xff] }
  0x13   : > { %1993 = vmatprep.mubr.msk.bf16.mxu0 %vm479_vm0, %v456_v4  ;;  %v449_v13 = vld [vmem:[%s2340_s29 + $0x48] sm:$0xff]  ;;  %v459_v14 = vpack.c.bf16 %v447_v11, %v446_v10  ;;  %v450_v16 = vld [vmem:[%s2340_s29 + $0x50] sm:$0xff]  ;;  %v451_v17 = vld [vmem:[%s2340_s29 + $0x58] sm:$0xff] }
  0x14   : > { %1994 = vmatmul.mubr.msk.bf16.vlgmr.msra.gmra.mrb[0].mxu0 %vm479_vm0, %v457_v8  ;;  %v460_v15 = vpack.c.bf16 %v449_v13, %v448_v12  ;;  %v452_v18 = vld [vmem:[%s2340_s29 + $0x60] sm:$0xff]  ;;  %v453_v19 = vld [vmem:[%s2340_s29 + $0x68] sm:$0xff]  ;;  %v461_v20 = vpack.c.bf16 %v451_v17, %v450_v16  ;;  %v454_v22 = vld [vmem:[%s2340_s29 + $0x70] sm:$0xff] }
  0x15   : > { %1997 = vmatprep.mubr.msk.bf16.mxu0 %vm479_vm0, %v458_v9  ;;  %v462_v21 = vpack.c.bf16 %v453_v19, %v452_v18  ;;  %v455_v23 = vld [vmem:[%s2340_s29 + $0x78] sm:$0xff]  ;;  %2030 = vmatpush3.bf16.msra.mxu0 %v2117_v28 }
  0x16   : > { %v463_v24 = vpack.c.bf16 %v455_v23, %v454_v22  ;;  %v1886_v22 = vld [vmem:[%s2910_s5] ss:$0 sm:$0xff] }
  0x1c   : > { %1998 = vmatmul.mubr.msk.bf16.gmra.mrb[4].mxu0 %vm479_vm0, %v459_v14 }
  0x1d   : > { %2001 = vmatprep.mubr.msk.bf16.mxu0 %vm479_vm0, %v460_v15 }
  0x24   : > { %2002 = vmatmul.mubr.msk.bf16.gmra.mrb[8].mxu0 %vm479_vm0, %v461_v20 }
  0x25   : > { %2005 = vmatprep.mubr.msk.bf16.mxu0 %vm479_vm0, %v462_v21 }
  0x2c   : > { %2006 = vmatmul.mubr.msk.bf16.gmra.mrb[12].mxu0 %vm479_vm0, %v463_v24 }
  0xe7   : > { %v1995_v30 = vpop.f32.mrb[0].mxu0 }
  0xe8   : > { %v547_v31 = vadd.f32 %v1995_v30, %v1876_v29  ;;  %v538_v32 = vpop.f32.mrb[1].mxu0 }
  0xe9   : > { %v539_v33 = vadd.f32 %v1876_v29, %v538_v32  ;;  %v1996_v34 = vpop.f32.mrb[2].mxu0 }
  0xea   : > { %v550_v35 = vadd.f32 %v1996_v34, %v1876_v29  ;;  %v541_v36 = vpop.f32.mrb[3].mxu0  ;;  %v603_v38 = vmax.f32 %v547_v31, 0.0 }
  0xeb   : > { %v542_v37 = vadd.f32 %v1876_v29, %v541_v36  ;;  %v601_v40 = vmax.f32 %v539_v33, 0.0 }
  0xec   : > { %v604_v39 = vmax.f32 %v550_v35, 0.0 }
  0xed   : > { %v602_v41 = vmax.f32 %v542_v37, 0.0 }
  0xee   : > { %v618_v42 = vpack.c.bf16 %v604_v39, %v603_v38 }
  0xef   : > { %v1999_v43 = vpop.f32.mrb[4].mxu0  ;;  %v617_v44 = vpack.c.bf16 %v602_v41, %v601_v40 }
  0xf0   : > { %v563_v45 = vadd.f32 %v1999_v43, %v1876_v29  ;;  %v554_v46 = vpop.f32.mrb[5].mxu0 }
  0xf1   : > { %v555_v47 = vadd.f32 %v1876_v29, %v554_v46  ;;  %v2000_v48 = vpop.f32.mrb[6].mxu0  ;;  %2013 = vmatprep.mubr.msk.bf16.mxu1 %vm648_vm1, %v617_v44 }
  0xf2   : > { %v566_v49 = vadd.f32 %v2000_v48, %v1876_v29  ;;  %v557_v50 = vpop.f32.mrb[7].mxu0  ;;  %2014 = vmatmul.mubr.msk.bf16.vlgmr.msra.gmra.mrb[0].mxu1 %vm648_vm1, %v618_v42  ;;  %v607_v52 = vmax.f32 %v563_v45, 0.0 }
  0xf3   : > { %v558_v51 = vadd.f32 %v1876_v29, %v557_v50  ;;  %2048 = vmatpush3.bf16.msra.mxu1 %v2116_v27  ;;  %v605_v54 = vmax.f32 %v555_v47, 0.0 }
  0xf4   : > { %v608_v53 = vmax.f32 %v566_v49, 0.0 }
  0xf5   : > { %v606_v55 = vmax.f32 %v558_v51, 0.0 }
  0xf6   : > { %v620_v56 = vpack.c.bf16 %v608_v53, %v607_v52 }
  0xf7   : > { %v619_v57 = vpack.c.bf16 %v606_v55, %v605_v54  ;;  %v2003_v58 = vpop.f32.mrb[8].mxu0 }
  0xf8   : > { %v579_v59 = vadd.f32 %v2003_v58, %v1876_v29  ;;  %v570_v60 = vpop.f32.mrb[9].mxu0 }
  0xf9   : > { %v571_v61 = vadd.f32 %v1876_v29, %v570_v60  ;;  %v2004_v62 = vpop.f32.mrb[10].mxu0  ;;  %2017 = vmatprep.mubr.msk.bf16.mxu1 %vm648_vm1, %v619_v57 }
  0xfa   : > { %v582_v63 = vadd.f32 %v2004_v62, %v1876_v29  ;;  %v573_v0 = vpop.f32.mrb[11].mxu0  ;;  %2018 = vmatmul.mubr.msk.bf16.gmra.mrb[4].mxu1 %vm648_vm1, %v620_v56  ;;  %v611_v2 = vmax.f32 %v579_v59, 0.0 }
  0xfb   : > { %v574_v1 = vadd.f32 %v1876_v29, %v573_v0  ;;  %v609_v4 = vmax.f32 %v571_v61, 0.0 }
  0xfc   : > { %v612_v3 = vmax.f32 %v582_v63, 0.0 }
  0xfd   : > { %v610_v5 = vmax.f32 %v574_v1, 0.0 }
  0xfe   : > { %v622_v6 = vpack.c.bf16 %v612_v3, %v611_v2 }
  0xff   : > { %v621_v7 = vpack.c.bf16 %v610_v5, %v609_v4  ;;  %v2007_v8 = vpop.f32.mrb[12].mxu0 }
 0x100   : > { %v595_v9 = vadd.f32 %v2007_v8, %v1876_v29  ;;  %v586_v10 = vpop.f32.mrb[13].mxu0 }
 0x101   : > { %v587_v11 = vadd.f32 %v1876_v29, %v586_v10  ;;  %v2008_v12 = vpop.f32.mrb[14].mxu0  ;;  %2021 = vmatprep.mubr.msk.bf16.mxu1 %vm648_vm1, %v621_v7 }
 0x102   : > { %v598_v13 = vadd.f32 %v2008_v12, %v1876_v29  ;;  %v589_v14 = vpop.f32.mrb[15].mxu0  ;;  %2022 = vmatmul.mubr.msk.bf16.gmra.mrb[8].mxu1 %vm648_vm1, %v622_v6  ;;  %v615_v16 = vmax.f32 %v595_v9, 0.0 }
 0x103   : > { %v590_v15 = vadd.f32 %v1876_v29, %v589_v14  ;;  %v613_v18 = vmax.f32 %v587_v11, 0.0 }
 0x104   : > { %v616_v17 = vmax.f32 %v598_v13, 0.0 }
 0x105   : > { %v614_v19 = vmax.f32 %v590_v15, 0.0  ;;  %v1274_v15 = vld [vmem:[%s2915_s10] sm:$0xf] }
 0x106   : > { %v624_v20 = vpack.c.bf16 %v616_v17, %v615_v16  ;;  %2101 = vmatprep.subr.msk.bf16.mxu0 %vm1300_vm2, %v1274_v15  ;;  %v1302_v16 = vsel %vm1300_vm2, %v1274_v15, 0  ;;  %v1044_v17 = vld [vmem:[%s2415_s30 + $0x10] sm:$0xff] }
 0x107   : > { %v623_v21 = vpack.c.bf16 %v614_v19, %v613_v18  ;;  %v1042_v18 = vld [vmem:[%s2415_s30] sm:$0xff]  ;;  %v1060_v19 = vmax.f32 %v1044_v17, 1e-30 }
 0x109   : > { %2025 = vmatprep.mubr.msk.bf16.mxu1 %vm648_vm1, %v623_v21  ;;  %2119 = vlog2.f32 %v1060_v19  ;;  %v1045_v21 = vld [vmem:[%s2415_s30 + $0x18] sm:$0xff] }
 0x10a   : > { %2026 = vmatmul.mubr.msk.bf16.gmra.mrb[12].mxu1 %vm648_vm1, %v624_v20  ;;  %v1058_v20 = vmax.f32 %v1042_v18, 1e-30 }
 0x10c   : > { %2121 = vlog2.f32 %v1058_v20 }
 0x1c5   : > { %v2015_v23 = vpop.f32.mrb[0].mxu1 }
 0x1c6   : > { %v716_v24 = vadd.f32 %v2015_v23, %v1886_v22  ;;  %v707_v25 = vpop.f32.mrb[1].mxu1  ;;  %v1061_v23 = vmax.f32 %v1045_v21, 1e-30 }
 0x1c7   : > { %v708_v26 = vadd.f32 %v1886_v22, %v707_v25  ;;  %v2016_v27 = vpop.f32.mrb[2].mxu1 }
 0x1c8   : > { %v719_v28 = vadd.f32 %v2016_v27, %v1886_v22  ;;  %v710_v29 = vpop.f32.mrb[3].mxu1  ;;  %v772_v31 = vmax.f32 %v716_v24, 0.0  ;;  %v1048_v24 = vld [vmem:[%s2415_s30 + $0x30] sm:$0xff]  ;;  %2123 = vlog2.f32 %v1061_v23 }
 0x1c9   : > { %v711_v30 = vadd.f32 %v1886_v22, %v710_v29  ;;  %v770_v33 = vmax.f32 %v708_v26, 0.0  ;;  %v1046_v26 = vld [vmem:[%s2415_s30 + $0x20] sm:$0xff]  ;;  %v1064_v27 = vmax.f32 %v1048_v24, 1e-30 }
 0x1ca   : > { %v773_v32 = vmax.f32 %v719_v28, 0.0  ;;  %v1049_v28 = vld [vmem:[%s2415_s30 + $0x38] sm:$0xff]  ;;  %v1062_v29 = vmax.f32 %v1046_v26, 1e-30 }
 0x1cb   : > { %v771_v34 = vmax.f32 %v711_v30, 0.0  ;;  %v1047_v30 = vld [vmem:[%s2415_s30 + $0x28] sm:$0xff] }
 0x1cc   : > { %v787_v35 = vpack.c.bf16 %v773_v32, %v772_v31  ;;  %v1065_v31 = vmax.f32 %v1049_v28, 1e-30  ;;  %v1052_v32 = vld [vmem:[%s2415_s30 + $0x50] sm:$0xff] }
 0x1cd   : > { %v786_v36 = vpack.c.bf16 %v771_v34, %v770_v33  ;;  %v2019_v37 = vpop.f32.mrb[4].mxu1  ;;  %v2120_v33 = vpop.eup %2119 }
 0x1ce   : > { %v732_v38 = vadd.f32 %v2019_v37, %v1886_v22  ;;  %v723_v39 = vpop.f32.mrb[5].mxu1  ;;  %v2122_v34 = vpop.eup %2121  ;;  %v1050_v37 = vld [vmem:[%s2415_s30 + $0x40] sm:$0xff] }
 0x1cf   : > { %v724_v40 = vadd.f32 %v1886_v22, %v723_v39  ;;  %v2020_v41 = vpop.f32.mrb[6].mxu1  ;;  %2031 = vmatprep.mubr.msk.bf16.mxu0 %vm479_vm0, %v786_v36  ;;  %2049 = vmatprep.mubr.msk.bf16.mxu1 %vm479_vm0, %v786_v36  ;;  %v1068_v36 = vmax.f32 %v1052_v32, 1e-30  ;;  %v1075_v39 = vmul.f32 0.6931472, %v2122_v34 }
 0x1d0   : > { %v735_v42 = vadd.f32 %v2020_v41, %v1886_v22  ;;  %v726_v43 = vpop.f32.mrb[7].mxu1  ;;  %2032 = vmatmul.mubr.msk.bf16.vlgmr.msra.gmra.mrb[16].mxu0 %vm479_vm0, %v787_v35  ;;  %2050 = vmatmul.mubr.msk.bf16.vlgmr.msra.gmra.mrb[16].mxu1 %vm479_vm0, %v787_v35  ;;  %v776_v45 = vmax.f32 %v732_v38, 0.0  ;;  %v1063_v35 = vmax.f32 %v1047_v30, 1e-30  ;;  %v1079_v38 = vmul.f32 0.6931472, %v2120_v33 }
 0x1d1   : > { %v727_v44 = vadd.f32 %v1886_v22, %v726_v43  ;;  %v774_v47 = vmax.f32 %v724_v40, 0.0  ;;  %2066 = vmatpush3.bf16.msra.mxu0 %v1302_v16  ;;  %v1066_v40 = vmax.f32 %v1050_v37, 1e-30  ;;  %v1053_v41 = vld [vmem:[%s2415_s30 + $0x58] sm:$0xff] }
 0x1d2   : > { %v777_v46 = vmax.f32 %v735_v42, 0.0  ;;  %v2124_v42 = vpop.eup %2123  ;;  %v1108_v43 = vsub.f32 0.0, %v1079_v38 }
 0x1d3   : > { %v775_v48 = vmax.f32 %v727_v44, 0.0  ;;  %v1051_v44 = vld [vmem:[%s2415_s30 + $0x48] sm:$0xff] }
 0x1d4   : > { %v789_v49 = vpack.c.bf16 %v777_v46, %v776_v45  ;;  %v1106_v45 = vsub.f32 0.0, %v1075_v39  ;;  %v1056_v46 = vld [vmem:[%s2415_s30 + $0x70] sm:$0xff] }
 0x1d5   : > { %v788_v50 = vpack.c.bf16 %v775_v48, %v774_v47  ;;  %v2023_v51 = vpop.f32.mrb[8].mxu1  ;;  %v1069_v48 = vmax.f32 %v1053_v41, 1e-30 }
 0x1d6   : > { %v748_v52 = vadd.f32 %v2023_v51, %v1886_v22  ;;  %v739_v53 = vpop.f32.mrb[9].mxu1  ;;  %v1067_v51 = vmax.f32 %v1051_v44, 1e-30 }
 0x1d7   : > { %v740_v54 = vadd.f32 %v1886_v22, %v739_v53  ;;  %v2024_v55 = vpop.f32.mrb[10].mxu1  ;;  %2035 = vmatprep.mubr.msk.bf16.mxu0 %vm479_vm0, %v788_v50  ;;  %2053 = vmatprep.mubr.msk.bf16.mxu1 %vm479_vm0, %v788_v50  ;;  %v1081_v50 = vmul.f32 0.6931472, %v2124_v42  ;;  %v1072_v53 = vmax.f32 %v1056_v46, 1e-30 }
 0x1d8   : > { %v751_v56 = vadd.f32 %v2024_v55, %v1886_v22  ;;  %v742_v57 = vpop.f32.mrb[11].mxu1  ;;  %2036 = vmatmul.mubr.msk.bf16.gmra.mrb[20].mxu0 %vm479_vm0, %v789_v49  ;;  %2054 = vmatmul.mubr.msk.bf16.gmra.mrb[20].mxu1 %vm479_vm0, %v789_v49  ;;  %v780_v59 = vmax.f32 %v748_v52, 0.0  ;;  %v1054_v52 = vld [vmem:[%s2415_s30 + $0x60] sm:$0xff] }
 0x1d9   : > { %v743_v58 = vadd.f32 %v1886_v22, %v742_v57  ;;  %v778_v61 = vmax.f32 %v740_v54, 0.0 }
 0x1da   : > { %v781_v60 = vmax.f32 %v751_v56, 0.0 }
 0x1db   : > { %v779_v62 = vmax.f32 %v743_v58, 0.0  ;;  %v1070_v58 = vmax.f32 %v1054_v52, 1e-30 }
 0x1dc   : > { %v791_v63 = vpack.c.bf16 %v781_v60, %v780_v59  ;;  %v1109_v59 = vsub.f32 0.0, %v1081_v50 }
 0x1dd   : > { %v790_v0 = vpack.c.bf16 %v779_v62, %v778_v61  ;;  %v2027_v1 = vpop.f32.mrb[12].mxu1  ;;  %v1057_v62 = vld [vmem:[%s2415_s30 + $0x78] sm:$0xff] }
 0x1de   : > { %v764_v2 = vadd.f32 %v2027_v1, %v1886_v22  ;;  %v755_v3 = vpop.f32.mrb[13].mxu1 }
 0x1df   : > { %v756_v4 = vadd.f32 %v1886_v22, %v755_v3  ;;  %v2028_v5 = vpop.f32.mrb[14].mxu1  ;;  %2039 = vmatprep.mubr.msk.bf16.mxu0 %vm479_vm0, %v790_v0  ;;  %2057 = vmatprep.mubr.msk.bf16.mxu1 %vm479_vm0, %v790_v0 }
 0x1e0   : > { %v767_v6 = vadd.f32 %v2028_v5, %v1886_v22  ;;  %v758_v7 = vpop.f32.mrb[15].mxu1  ;;  %2040 = vmatmul.mubr.msk.bf16.gmra.mrb[24].mxu0 %vm479_vm0, %v791_v63  ;;  %2058 = vmatmul.mubr.msk.bf16.gmra.mrb[24].mxu1 %vm479_vm0, %v791_v63  ;;  %v784_v9 = vmax.f32 %v764_v2, 0.0  ;;  %v1055_v5 = vld [vmem:[%s2415_s30 + $0x68] sm:$0xff] }
 0x1e1   : > { %v759_v8 = vadd.f32 %v1886_v22, %v758_v7  ;;  %v782_v11 = vmax.f32 %v756_v4, 0.0  ;;  %v1043_v22 = vld [vmem:[%s2415_s30 + $0x8] sm:$0xff]  ;;  %v1073_v4 = vmax.f32 %v1057_v62, 1e-30 }
 0x1e2   : > { %v785_v10 = vmax.f32 %v767_v6, 0.0  ;;  %v1059_v25 = vmax.f32 %v1043_v22, 1e-30 }
 0x1e3   : > { %v783_v12 = vmax.f32 %v759_v8, 0.0 }
 0x1e4   : > { %v793_v13 = vpack.c.bf16 %v785_v10, %v784_v9  ;;  %2125 = vlog2.f32 %v1059_v25 }
 0x1e5   : > { %v792_v14 = vpack.c.bf16 %v783_v12, %v782_v11  ;;  %2127 = vlog2.f32 %v1064_v27  ;;  %v2436_v11 = vld [vmem:[%s2912_s7] ss:$0 sm:$0xff]  ;;  %v1071_v12 = vmax.f32 %v1055_v5, 1e-30 }
 0x1e6   : > { %2129 = vlog2.f32 %v1062_v29 }
 0x1e7   : > { %2043 = vmatprep.mubr.msk.bf16.mxu0 %vm479_vm0, %v792_v14  ;;  %2061 = vmatprep.mubr.msk.bf16.mxu1 %vm479_vm0, %v792_v14  ;;  %2131 = vlog2.f32 %v1065_v31  ;;  %v2441_v14 = vld [vmem:[%s2914_s9] ss:$0 sm:$0xff] }
 0x1e8   : > { %2044 = vmatmul.mubr.msk.bf16.gmra.mrb[28].mxu0 %vm479_vm0, %v793_v13  ;;  %2062 = vmatmul.mubr.msk.bf16.gmra.mrb[28].mxu1 %vm479_vm0, %v793_v13  ;;  %2133 = vlog2.f32 %v1063_v35 }
 0x1e9   : > { %2135 = vlog2.f32 %v1068_v36 }
 0x1ea   : > { %2137 = vlog2.f32 %v1066_v40 }
 0x1eb   : > { %2139 = vlog2.f32 %v1108_v43 }
 0x1ec   : > { %2141 = vlog2.f32 %v1106_v45 }
 0x1ed   : > { %2143 = vlog2.f32 %v1069_v48 }
 0x1ee   : > { %v2126_v47 = vpop.eup %2125  ;;  %2145 = vlog2.f32 %v1067_v51 }
 0x1ef   : > { %v2128_v49 = vpop.eup %2127  ;;  %v1077_v55 = vmul.f32 0.6931472, %v2126_v47  ;;  %2147 = vlog2.f32 %v1072_v53 }
 0x1f0   : > { %v2130_v54 = vpop.eup %2129  ;;  %v1087_v57 = vmul.f32 0.6931472, %v2128_v49  ;;  %2149 = vlog2.f32 %v1070_v58 }
 0x1f1   : > { %v2132_v56 = vpop.eup %2131  ;;  %v1083_v61 = vmul.f32 0.6931472, %v2130_v54  ;;  %v1107_v0 = vsub.f32 0.0, %v1077_v55  ;;  %2151 = vlog2.f32 %v1109_v59 }
 0x1f2   : > { %v2134_v60 = vpop.eup %2133  ;;  %v1089_v1 = vmul.f32 0.6931472, %v2132_v56  ;;  %v1112_v2 = vsub.f32 0.0, %v1087_v57 }
 0x1f3   : > { %v2136_v63 = vpop.eup %2135  ;;  %v1085_v3 = vmul.f32 0.6931472, %v2134_v60  ;;  %v1110_v7 = vsub.f32 0.0, %v1083_v61  ;;  %2153 = vlog2.f32 %v1107_v0 }
 0x1f4   : > { %v2138_v6 = vpop.eup %2137  ;;  %v1095_v8 = vmul.f32 0.6931472, %v2136_v63  ;;  %v1113_v9 = vsub.f32 0.0, %v1089_v1  ;;  %2155 = vlog2.f32 %v1112_v2 }
 0x1f5   : > { %v2140_v10 = vpop.eup %2139  ;;  %v1111_v15 = vsub.f32 0.0, %v1085_v3  ;;  %v1091_v16 = vmul.f32 0.6931472, %v2138_v6  ;;  %2157 = vlog2.f32 %v1073_v4 }
 0x1f6   : > { %v2142_v13 = vpop.eup %2141  ;;  %2159 = vlog2.f32 %v1110_v7  ;;  %v1116_v18 = vsub.f32 0.0, %v1095_v8  ;;  %v2447_v25 = vmul.f32 0.6931472, %v2140_v10 }
 0x1f7   : > { %v2144_v17 = vpop.eup %2143  ;;  %2161 = vlog2.f32 %v1113_v9  ;;  %v2452_v29 = vmul.f32 0.6931472, %v2142_v13  ;;  %v1114_v32 = vsub.f32 0.0, %v1091_v16 }
 0x1f8   : > { %v2146_v19 = vpop.eup %2145  ;;  %2163 = vlog2.f32 %v1071_v12  ;;  %v1097_v38 = vmul.f32 0.6931472, %v2144_v17 }
 0x1f9   : > { %v2148_v22 = vpop.eup %2147  ;;  %2165 = vlog2.f32 %v1111_v15  ;;  %v1093_v42 = vmul.f32 0.6931472, %v2146_v19 }
 0x1fa   : > { %v2150_v33 = vpop.eup %2149  ;;  %2167 = vlog2.f32 %v1116_v18  ;;  %v1103_v43 = vmul.f32 0.6931472, %v2148_v22  ;;  %v1117_v55 = vsub.f32 0.0, %v1097_v38 }
 0x1fb   : > { %v2152_v39 = vpop.eup %2151  ;;  %2169 = vlog2.f32 %v1114_v32  ;;  %v1099_v51 = vmul.f32 0.6931472, %v2150_v33  ;;  %v1115_v60 = vsub.f32 0.0, %v1093_v42 }
 0x1fc   : > { %v2469_v53 = vmul.f32 0.6931472, %v2152_v39  ;;  %v1120_v2 = vsub.f32 0.0, %v1103_v43 }
 0x1fd   : > { %v2154_v48 = vpop.eup %2153  ;;  %v1118_v8 = vsub.f32 0.0, %v1099_v51 }
 0x1fe   : > { %v2156_v52 = vpop.eup %2155  ;;  %v2475_v62 = vmul.f32 0.6931472, %v2154_v48 }
 0x1ff   : > { %v2158_v56 = vpop.eup %2157  ;;  %v2482_v4 = vmul.f32 0.6931472, %v2156_v52 }
 0x200   : > { %v2160_v61 = vpop.eup %2159  ;;  %v1105_v16 = vmul.f32 0.6931472, %v2158_v56 }
 0x201   : > { %v2162_v3 = vpop.eup %2161  ;;  %v2496_v18 = vmul.f32 0.6931472, %v2160_v61 }
 0x202   : > { %v2164_v9 = vpop.eup %2163  ;;  %v1121_v33 = vsub.f32 0.0, %v1105_v16 }
 0x203   : > { %v2166_v17 = vpop.eup %2165 }
 0x2a3   : > { %v2033_v20 = vpop.f32.mrb[16].mxu0  ;;  %v2051_v21 = vpop.f32.mrb[16].mxu1 }
 0x2a4   : > { %v2444_v23 = vadd.f32 %v2033_v20, %v2436_v11  ;;  %v988_v24 = vadd.f32 %v2051_v21, %v2441_v14  ;;  %v867_v26 = vpop.f32.mrb[17].mxu0  ;;  %v979_v27 = vpop.f32.mrb[17].mxu1 }
 0x2a5   : > { %v2450_v28 = vadd.f32 %v2441_v14, %v979_v27  ;;  %v2034_v30 = vpop.f32.mrb[18].mxu0  ;;  %v2052_v31 = vpop.f32.mrb[18].mxu1  ;;  %v2463_v45 = vadd.f32 %v2436_v11, %v867_v26 }
 0x2a6   : > { %v1156_v34 = vsub.f32 0.0, %v988_v24  ;;  %v991_v35 = vadd.f32 %v2052_v31, %v2441_v14  ;;  %1655 = vrot.lane.b32.xlu0 %v988_v24, %s2255_s17  ;;  %v982_v36 = vpop.f32.mrb[19].mxu1  ;;  %1574 = vrot.lane.b32.xlu1 %v2444_v23, %s2256_s18  ;;  %v870_v37 = vpop.f32.mrb[19].mxu0  ;;  %v2466_v46 = vadd.f32 %v2034_v30, %v2436_v11  ;;  %v1101_v30 = vmul.f32 0.6931472, %v2164_v9 }
 0x2a7   : > { %v1154_v40 = vsub.f32 0.0, %v2450_v28  ;;  %v2460_v41 = vadd.f32 %v2441_v14, %v982_v36  ;;  %v2502_v21 = vpop.eup %2167  ;;  %v871_v22 = vadd.f32 %v2436_v11, %v870_v37  ;;  %v2507_v31 = vmul.f32 0.6931472, %v2162_v3 }
 0x2a8   : > { %v1174_v44 = vmul.f32 1.442695, %v1156_v34  ;;  %v1157_v47 = vsub.f32 0.0, %v991_v35  ;;  %v2512_v34 = vpop.eup %2169  ;;  %v2514_v36 = vmul.f32 0.6931472, %v2166_v17  ;;  %v1119_v52 = vsub.f32 0.0, %v1101_v30 }
 0x2a9   : > { %v1170_v49 = vmul.f32 1.442695, %v1154_v40  ;;  %v1155_v50 = vsub.f32 0.0, %v2460_v41 }
 0x2aa   : > { %2171 = vpow2.f32 %v1174_v44  ;;  %v1176_v54 = vmul.f32 1.442695, %v1157_v47  ;;  %1576 = vrot.lane.b32.xlu1 %v2466_v46, %s2256_s18  ;;  %1570 = vrot.lane.b32.xlu0 %v2463_v45, %s2256_s18 }
 0x2ab   : > { %2173 = vpow2.f32 %v1170_v49  ;;  %v1172_v57 = vmul.f32 1.442695, %v1155_v50  ;;  %v2037_v58 = vpop.f32.mrb[20].mxu0  ;;  %v2055_v59 = vpop.f32.mrb[20].mxu1 }
 0x2ac   : > { %2175 = vpow2.f32 %v1176_v54  ;;  %v2478_v63 = vadd.f32 %v2055_v59, %v2441_v14  ;;  %v2480_v0 = vpop.f32.mrb[21].mxu0  ;;  %v995_v1 = vpop.f32.mrb[21].mxu1  ;;  %v2519_v40 = vadd.f32 %v2037_v58, %v2436_v11 }
 0x2ad   : > { %2177 = vpow2.f32 %v1172_v57  ;;  %v2485_v5 = vadd.f32 %v2441_v14, %v995_v1  ;;  %v2038_v6 = vpop.f32.mrb[22].mxu0  ;;  %v2056_v7 = vpop.f32.mrb[22].mxu1 }
 0x2ae   : > { %v1160_v10 = vsub.f32 0.0, %v2478_v63  ;;  %v2489_v12 = vadd.f32 %v2056_v7, %v2441_v14  ;;  %v998_v13 = vpop.f32.mrb[23].mxu1  ;;  %1657 = vrot.lane.b32.xlu1 %v991_v35, %s2255_s17  ;;  %v2492_v15 = vpop.f32.mrb[23].mxu0  ;;  %1651 = vrot.lane.b32.xlu0 %v2450_v28, %s2255_s17  ;;  %2179 = vlog2.f32 %v1117_v55  ;;  %v2522_v42 = vadd.f32 %v2038_v6, %v2436_v11 }
 0x2af   : > { %v1158_v19 = vsub.f32 0.0, %v2485_v5  ;;  %v2500_v20 = vadd.f32 %v2441_v14, %v998_v13  ;;  %2181 = vlog2.f32 %v1115_v60 }
 0x2b0   : > { %v1182_v24 = vmul.f32 1.442695, %v1160_v10  ;;  %v1161_v26 = vsub.f32 0.0, %v2489_v12  ;;  %2183 = vlog2.f32 %v1120_v2 }
 0x2b1   : > { %v1178_v27 = vmul.f32 1.442695, %v1158_v19  ;;  %v1159_v28 = vsub.f32 0.0, %v2500_v20  ;;  %2185 = vlog2.f32 %v1118_v8  ;;  %v887_v19 = vadd.f32 %v2436_v11, %v2492_v15 }
 0x2b2   : > { %2187 = vpow2.f32 %v1182_v24  ;;  %v1184_v32 = vmul.f32 1.442695, %v1161_v26  ;;  %1653 = vrot.lane.b32.xlu1 %v2460_v41, %s2255_s17  ;;  %1572 = vrot.lane.b32.xlu0 %v871_v22, %s2256_s18 }
 0x2b3   : > { %2189 = vpow2.f32 %v1178_v27  ;;  %v1180_v35 = vmul.f32 1.442695, %v1159_v28  ;;  %v2516_v37 = vpop.f32.mrb[24].mxu0  ;;  %v2059_v38 = vpop.f32.mrb[24].mxu1 }
 0x2b4   : > { %v2172_v39 = vpop.eup %2171  ;;  %2191 = vpow2.f32 %v1184_v32  ;;  %v2525_v41 = vadd.f32 %v2059_v38, %v2441_v14  ;;  %v2527_v43 = vpop.f32.mrb[25].mxu0 }
 0x2b5   : > { %v1011_v44 = vpop.f32.mrb[25].mxu1  ;;  %v2174_v47 = vpop.eup %2173  ;;  %v1204_v48 = vmul.f32 %v2172_v39, %v2447_v25  ;;  %2193 = vpow2.f32 %v1180_v35 }
 0x2b6   : > { %v2531_v49 = vadd.f32 %v2441_v14, %v1011_v44  ;;  %v2533_v50 = vpop.f32.mrb[26].mxu0  ;;  %v2060_v51 = vpop.f32.mrb[26].mxu1  ;;  %v1202_v55 = vmul.f32 %v2174_v47, %v2452_v29  ;;  %v1164_v56 = vsub.f32 0.0, %v2525_v41  ;;  %1584 = vrot.lane.b32.xlu1 %v2522_v42, %s2256_s18  ;;  %1582 = vrot.lane.b32.xlu0 %v2519_v40, %s2256_s18  ;;  %2195 = vlog2.f32 %v1121_v33 }
 0x2b7   : > { %v2176_v54 = vpop.eup %2175  ;;  %v2538_v57 = vadd.f32 %v2060_v51, %v2441_v14  ;;  %v1014_v58 = vpop.f32.mrb[27].mxu1  ;;  %v1220_v60 = vadd.f32 %v1204_v48, %v2444_v23  ;;  %2197 = vlog2.f32 %v1119_v52  ;;  %v1143_v48 = vmul.f32 0.6931472, %v2502_v21 }
 0x2b8   : > { %v2542_v25 = vpop.f32.mrb[27].mxu0  ;;  %v2178_v59 = vpop.eup %2177  ;;  %v1205_v29 = vmul.f32 %v2176_v54, %v2469_v53  ;;  %v1162_v61 = vsub.f32 0.0, %v2531_v49  ;;  %v2550_v1 = vadd.f32 %v2441_v14, %v1014_v58  ;;  %v1218_v3 = vadd.f32 %v1202_v55, %v2463_v45 }
 0x2b9   : > { %v2552_v2 = vpop.eup %2179  ;;  %v1203_v6 = vmul.f32 %v2178_v59, %v2475_v62  ;;  %v1190_v7 = vmul.f32 1.442695, %v1164_v56  ;;  %v1165_v8 = vsub.f32 0.0, %v2538_v57  ;;  %v1238_v10 = vmul.f32 1.442695, %v1220_v60 }
 0x2ba   : > { %v2557_v9 = vpop.eup %2181  ;;  %v1221_v23 = vadd.f32 %v1205_v29, %v2466_v46  ;;  %v1163_v53 = vsub.f32 0.0, %v2550_v1  ;;  %v1234_v16 = vmul.f32 1.442695, %v1218_v3  ;;  %v884_v45 = vadd.f32 %v2436_v11, %v2480_v0  ;;  %1665 = vrot.lane.b32.xlu1 %v2489_v12, %s2255_s17  ;;  %1663 = vrot.lane.b32.xlu0 %v2478_v63, %s2255_s17 }
 0x2bb   : > { %v2561_v13 = vpop.eup %2183  ;;  %v1219_v17 = vadd.f32 %v1203_v6, %v871_v22  ;;  %2199 = vpow2.f32 %v1190_v7  ;;  %v1186_v24 = vmul.f32 1.442695, %v1162_v61  ;;  %v2573_v26 = vpop.f32.mrb[28].mxu0  ;;  %v1192_v28 = vmul.f32 1.442695, %v1165_v8 }
 0x2bc   : > { %v2569_v62 = vpop.eup %2185  ;;  %2201 = vpow2.f32 %v1238_v10  ;;  %v1240_v46 = vmul.f32 1.442695, %v1221_v23  ;;  %v2063_v22 = vpop.f32.mrb[28].mxu1  ;;  %v1188_v35 = vmul.f32 1.442695, %v1163_v53  ;;  %v908_v3 = vadd.f32 %v2516_v37, %v2436_v11 }
 0x2bd   : > { %v2188_v27 = vpop.eup %2187  ;;  %2203 = vpow2.f32 %v1234_v16  ;;  %v1236_v0 = vmul.f32 1.442695, %v1219_v17  ;;  %v2576_v12 = vadd.f32 %v2063_v22, %v2441_v14  ;;  %v2578_v30 = vpop.f32.mrb[29].mxu0  ;;  %v911_v23 = vadd.f32 %v2533_v50, %v2436_v11 }
 0x2be   : > { %v1027_v63 = vpop.f32.mrb[29].mxu1  ;;  %v2190_v32 = vpop.eup %2189  ;;  %2205 = vpow2.f32 %v1240_v46  ;;  %v1208_v33 = vmul.f32 %v2188_v27, %v2482_v4  ;;  %1580 = vrot.lane.b32.xlu1 %v887_v19, %s2256_s18  ;;  %1578 = vrot.lane.b32.xlu0 %v884_v45, %s2256_s18  ;;  %v1141_v27 = vmul.f32 0.6931472, %v2557_v9 }
 0x2bf   : > { %v2582_v15 = vadd.f32 %v2441_v14, %v1027_v63  ;;  %v2584_v38 = vpop.f32.mrb[30].mxu0  ;;  %v2064_v39 = vpop.f32.mrb[30].mxu1  ;;  %2207 = vpow2.f32 %v1236_v0  ;;  %v1206_v47 = vmul.f32 %v2190_v32, %v2496_v18  ;;  %v1168_v51 = vsub.f32 0.0, %v2576_v12 }
 0x2c0   : > { %v2192_v44 = vpop.eup %2191  ;;  %v2589_v52 = vpop.f32.mrb[31].mxu0  ;;  %v1224_v55 = vadd.f32 %v1208_v33, %v2519_v40  ;;  %2209 = vpow2.f32 %v1186_v24 }
 0x2c1   : > { %v1030_v54 = vpop.f32.mrb[31].mxu1  ;;  %v2194_v4 = vpop.eup %2193  ;;  %v1209_v56 = vmul.f32 %v2192_v44, %v2507_v31  ;;  %v1166_v58 = vsub.f32 0.0, %v2582_v15  ;;  %v1222_v21 = vadd.f32 %v1206_v47, %v884_v45  ;;  %2211 = vpow2.f32 %v1192_v28 }
 0x2c2   : > { %v2596_v18 = vpop.eup %2195  ;;  %v1207_v59 = vmul.f32 %v2194_v4, %v2514_v36  ;;  %v1198_v60 = vmul.f32 1.442695, %v1168_v51  ;;  %v1246_v29 = vmul.f32 1.442695, %v1224_v55  ;;  %2213 = vpow2.f32 %v1188_v35  ;;  %1661 = vrot.lane.b32.xlu1 %v2500_v20, %s2255_s17  ;;  %1659 = vrot.lane.b32.xlu0 %v2485_v5, %s2255_s17 }
 0x2c3   : > { %v1225_v61 = vadd.f32 %v1209_v56, %v2522_v42  ;;  %v1242_v40 = vmul.f32 1.442695, %v1222_v21  ;;  %v2603_v31 = vadd.f32 %v2064_v39, %v2441_v14  ;;  %v2609_v36 = vpop.eup %2197  ;;  %v1194_v7 = vmul.f32 1.442695, %v1166_v58 }
 0x2c4   : > { %v1223_v6 = vadd.f32 %v1207_v59, %v887_v19  ;;  %2215 = vpow2.f32 %v1198_v60  ;;  %v2612_v37 = vadd.f32 %v2441_v14, %v1030_v54  ;;  %v1139_v14 = vmul.f32 0.6931472, %v2512_v34 }
 0x2c5   : > { %2217 = vpow2.f32 %v1246_v29  ;;  %v1248_v42 = vmul.f32 1.442695, %v1225_v61  ;;  %v2200_v8 = vpop.eup %2199  ;;  %v1169_v53 = vsub.f32 0.0, %v2603_v31  ;;  %v1145_v19 = vmul.f32 0.6931472, %v2552_v2 }
 0x2c6   : > { %2219 = vpow2.f32 %v1242_v40  ;;  %v1244_v10 = vmul.f32 1.442695, %v1223_v6  ;;  %v2617_v20 = vpop.eup %2201  ;;  %v1212_v5 = vmul.f32 %v2200_v8, %v1143_v48  ;;  %v1167_v16 = vsub.f32 0.0, %v2612_v37  ;;  %1592 = vrot.lane.b32.xlu1 %v911_v23, %s2256_s18  ;;  %1590 = vrot.lane.b32.xlu0 %v908_v3, %s2256_s18 }
 0x2c7   : > { %2221 = vpow2.f32 %v1248_v42  ;;  %v2620_v17 = vpop.eup %2203  ;;  %v1200_v45 = vmul.f32 1.442695, %v1169_v53  ;;  %v1151_v28 = vmul.f32 0.6931472, %v2561_v13  ;;  %v900_v2 = vadd.f32 %v2436_v11, %v2527_v43 }
 0x2c8   : > { %2223 = vpow2.f32 %v1244_v10  ;;  %v2625_v46 = vpop.eup %2205  ;;  %v1228_v50 = vadd.f32 %v1212_v5, %v908_v3  ;;  %v1196_v24 = vmul.f32 1.442695, %v1167_v16  ;;  %v903_v47 = vadd.f32 %v2436_v11, %v2542_v25 }
 0x2c9   : > { %2225 = vpow2.f32 %v1194_v7  ;;  %v2628_v22 = vpop.eup %2207  ;;  %v1267_v34 = vpack.c.bf16 %v2625_v46, %v2617_v20  ;;  %v1147_v56 = vmul.f32 0.6931472, %v2569_v62  ;;  %v1153_v59 = vmul.f32 0.6931472, %v2596_v18 }
 0x2ca   : > { %2227 = vpow2.f32 %v1200_v45  ;;  %v2210_v0 = vpop.eup %2209  ;;  %v1266_v63 = vpack.c.bf16 %v2628_v22, %v2620_v17  ;;  %1673 = vrot.lane.b32.xlu1 %v2538_v57, %s2255_s17  ;;  %1671 = vrot.lane.b32.xlu0 %v2525_v41, %s2255_s17  ;;  %v1254_v35 = vmul.f32 1.442695, %v1228_v50  ;;  %v924_v57 = vadd.f32 %v2573_v26, %v2436_v11 }
 0x2cb   : > { %2229 = vpow2.f32 %v1196_v24  ;;  %v2212_v32 = vpop.eup %2211  ;;  %v1210_v33 = vmul.f32 %v2210_v0, %v1139_v14  ;;  %v1149_v29 = vmul.f32 0.6931472, %v2609_v36  ;;  %v916_v6 = vadd.f32 %v2436_v11, %v2578_v30 }
 0x2cc   : > { %v2214_v9 = vpop.eup %2213  ;;  %v1213_v39 = vmul.f32 %v2212_v32, %v1145_v19  ;;  %2067 = vmatprep.mubr.msk.bf16.mxu0 %vm1275_vm3, %v1266_v63  ;;  %2231 = vpow2.f32 %v1254_v35  ;;  %v927_v7 = vadd.f32 %v2584_v38, %v2436_v11 }
 0x2cd   : > { %v1226_v44 = vadd.f32 %v1210_v33, %v900_v2  ;;  %v1211_v48 = vmul.f32 %v2214_v9, %v1141_v27  ;;  %2068 = vmatmul.mubr.msk.bf16.vlgmr.msra.gmra.mrb[32].mxu0 %vm1275_vm3, %v1267_v34 }
 0x2ce   : > { %v2216_v13 = vpop.eup %2215  ;;  %v1229_v51 = vadd.f32 %v1213_v39, %v911_v23  ;;  %1588 = vrot.lane.b32.xlu1 %v903_v47, %s2256_s18  ;;  %1586 = vrot.lane.b32.xlu0 %v900_v2, %s2256_s18  ;;  %v919_v23 = vadd.f32 %v2436_v11, %v2589_v52 }
 0x2cf   : > { %v2646_v43 = vpop.eup %2217  ;;  %v1216_v41 = vmul.f32 %v2216_v13, %v1151_v28  ;;  %v1250_v4 = vmul.f32 1.442695, %v1226_v44  ;;  %v1227_v55 = vadd.f32 %v1211_v48, %v903_v47 }
 0x2d0   : > { %v2650_v54 = vpop.eup %2219  ;;  %v1256_v58 = vmul.f32 1.442695, %v1229_v51 }
 0x2d1   : > { %v2655_v25 = vpop.eup %2221  ;;  %v1232_v21 = vadd.f32 %v1216_v41, %v924_v57  ;;  %2233 = vpow2.f32 %v1250_v4  ;;  %v1252_v26 = vmul.f32 1.442695, %v1227_v55 }
 0x2d2   : > { %v2224_v60 = vpop.eup %2223  ;;  %v1269_v61 = vpack.c.bf16 %v2655_v25, %v2646_v43  ;;  %2235 = vpow2.f32 %v1256_v58  ;;  %1669 = vrot.lane.b32.xlu1 %v2550_v1, %s2255_s17  ;;  %1667 = vrot.lane.b32.xlu0 %v2531_v49, %s2255_s17 }
 0x2d3   : > { %v2226_v62 = vpop.eup %2225  ;;  %v1268_v3 = vpack.c.bf16 %v2224_v60, %v2650_v54  ;;  %2237 = vpow2.f32 %v1252_v26  ;;  %v1262_v36 = vmul.f32 1.442695, %v1232_v21 }
 0x2d4   : > { %v2228_v40 = vpop.eup %2227  ;;  %v1214_v42 = vmul.f32 %v2226_v62, %v1147_v56 }
 0x2d5   : > { %v2230_v18 = vpop.eup %2229  ;;  %v1217_v8 = vmul.f32 %v2228_v40, %v1153_v59  ;;  %2071 = vmatprep.mubr.msk.bf16.mxu0 %vm1275_vm3, %v1268_v3  ;;  %2239 = vpow2.f32 %v1262_v36 }
 0x2d6   : > { %v1230_v10 = vadd.f32 %v1214_v42, %v916_v6  ;;  %v1215_v30 = vmul.f32 %v2230_v18, %v1149_v29  ;;  %2072 = vmatmul.mubr.msk.bf16.gmra.mrb[36].mxu0 %vm1275_vm3, %v1269_v61  ;;  %1600 = vrot.lane.b32.xlu1 %v927_v7, %s2256_s18  ;;  %v2232_v16 = vpop.eup %2231 }
 0x2d7   : > { %v1233_v53 = vadd.f32 %v1217_v8, %v927_v7  ;;  %1598 = vrot.lane.b32.xlu0 %v924_v57, %s2256_s18 }
 0x2d8   : > { %v1258_v1 = vmul.f32 1.442695, %v1230_v10  ;;  %v1231_v5 = vadd.f32 %v1215_v30, %v919_v23 }
 0x2d9   : > { %v1264_v49 = vmul.f32 1.442695, %v1233_v53 }
 0x2da   : > { %2241 = vpow2.f32 %v1258_v1  ;;  %v1260_v38 = vmul.f32 1.442695, %v1231_v5  ;;  %1681 = vrot.lane.b32.xlu1 %v2603_v31, %s2255_s17 }
 0x2db   : > { %2243 = vpow2.f32 %v1264_v49  ;;  %v2234_v14 = vpop.eup %2233  ;;  %1679 = vrot.lane.b32.xlu0 %v2576_v12, %s2255_s17 }
 0x2dc   : > { %2245 = vpow2.f32 %v1260_v38  ;;  %v2236_v11 = vpop.eup %2235 }
 0x2dd   : > { %v2238_v52 = vpop.eup %2237  ;;  %v1271_v45 = vpack.c.bf16 %v2236_v11, %v2232_v16 }
 0x2de   : > { %v1270_v50 = vpack.c.bf16 %v2238_v52, %v2234_v14  ;;  %1596 = vrot.lane.b32.xlu1 %v919_v23, %s2256_s18 }
 0x2df   : > { %1594 = vrot.lane.b32.xlu0 %v916_v6, %s2256_s18  ;;  %v2240_v19 = vpop.eup %2239 }
 0x2e0   : > { %2075 = vmatprep.mubr.msk.bf16.mxu0 %vm1275_vm3, %v1270_v50 }
 0x2e1   : > { %2076 = vmatmul.mubr.msk.bf16.gmra.mrb[40].mxu0 %vm1275_vm3, %v1271_v45 }
 0x2e2   : > { %1677 = vrot.lane.b32.xlu1 %v2612_v37, %s2255_s17 }
 0x2e3   : > { %1675 = vrot.lane.b32.xlu0 %v2582_v15, %s2255_s17  ;;  %v2118_v15 = vld [vmem:[%s2916_s11] sm:$0xff]  }
 0x2e4   : > { %v2242_v24 = vpop.eup %2241  ;;  %2083 = vmatprep.subr.bf16.mxu1 %v2118_v15 }
 0x2e5   : > { %v2244_v12 = vpop.eup %2243  ;;  %2084 = vmatpush3.bf16.msra.mxu1 %v2118_v15 }
 0x2e6   : > { %v2246_v31 = vpop.eup %2245  ;;  %v1273_v27 = vpack.c.bf16 %v2244_v12, %v2240_v19  ;;  %1738 = vrot.lane.b32.xlu1 %v2625_v46, %s2257_s19 }
 0x2e7   : > { %v1272_v34 = vpack.c.bf16 %v2246_v31, %v2242_v24  ;;  %1736 = vrot.lane.b32.xlu0 %v2617_v20, %s2257_s19 }
 0x2e9   : > { %2079 = vmatprep.mubr.msk.bf16.mxu0 %vm1275_vm3, %v1272_v34 }
 0x2ea   : > { %2080 = vmatmul.mubr.msk.bf16.gmra.mrb[44].mxu0 %vm1275_vm3, %v1273_v27  ;;  %1734 = vrot.lane.b32.xlu1 %v2628_v22, %s2257_s19 }
 0x2eb   : > { %1732 = vrot.lane.b32.xlu0 %v2620_v17, %s2257_s19 }
 0x2ee   : > { %1746 = vrot.lane.b32.xlu1 %v2655_v25, %s2257_s19 }
 0x2ef   : > { %1744 = vrot.lane.b32.xlu0 %v2646_v43, %s2257_s19 }
 0x2f2   : > { %1742 = vrot.lane.b32.xlu1 %v2224_v60, %s2257_s19 }
 0x2f3   : > { %1740 = vrot.lane.b32.xlu0 %v2650_v54, %s2257_s19 }
 0x2f6   : > { %1754 = vrot.lane.b32.xlu1 %v2236_v11, %s2257_s19 }
 0x2f7   : > { %1752 = vrot.lane.b32.xlu0 %v2232_v16, %s2257_s19 }
 0x2fa   : > { %1750 = vrot.lane.b32.xlu1 %v2238_v52, %s2257_s19 }
 0x2fb   : > { %1748 = vrot.lane.b32.xlu0 %v2234_v14, %s2257_s19 }
 0x2fe   : > { %1758 = vrot.lane.b32.xlu1 %v2246_v31, %s2257_s19 }
 0x2ff   : > { %1756 = vrot.lane.b32.xlu0 %v2242_v24, %s2257_s19 }
 0x302   : > { %1762 = vrot.lane.b32.xlu1 %v2244_v12, %s2257_s19 }
 0x303   : > { %1760 = vrot.lane.b32.xlu0 %v2240_v19, %s2257_s19 }
 0x318   : > { %v1656_v55 = vpop.permute.xlu0 %1655  ;;  %v1575_v56 = vpop.permute.xlu1 %1574 }
 0x31c   : > { %v1571_v25 = vpop.permute.xlu0 %1570  ;;  %v1577_v58 = vpop.permute.xlu1 %1576 }
 0x320   : > { %v1652_v21 = vpop.permute.xlu0 %1651  ;;  %v1658_v59 = vpop.permute.xlu1 %1657 }
 0x324   : > { %v1573_v60 = vpop.permute.xlu0 %1572  ;;  %v1654_v26 = vpop.permute.xlu1 %1653 }
 0x328   : > { %v1583_v29 = vpop.permute.xlu0 %1582  ;;  %v2708_v61 = vpop.permute.xlu1 %1584 }
 0x32c   : > { %v1664_v62 = vpop.permute.xlu0 %1663  ;;  %v2710_v3 = vpop.permute.xlu1 %1665 }
 0x330   : > { %v1579_v40 = vpop.permute.xlu0 %1578  ;;  %v2712_v6 = vpop.permute.xlu1 %1580 }
 0x334   : > { %v1660_v42 = vpop.permute.xlu0 %1659  ;;  %v2714_v18 = vpop.permute.xlu1 %1661 }
 0x338   : > { %v2716_v36 = vpop.permute.xlu0 %1590  ;;  %v2718_v7 = vpop.permute.xlu1 %1592 }
 0x33c   : > { %v2720_v8 = vpop.permute.xlu0 %1671  ;;  %v2722_v10 = vpop.permute.xlu1 %1673 }
 0x340   : > { %v2724_v23 = vpop.permute.xlu0 %1586  ;;  %v2726_v30 = vpop.permute.xlu1 %1588 }
 0x344   : > { %v2728_v53 = vpop.permute.xlu0 %1667  ;;  %v2730_v1 = vpop.permute.xlu1 %1669 }
 0x348   : > { %v2734_v49 = vpop.permute.xlu1 %1600 }
 0x349   : > { %v2732_v5 = vpop.permute.xlu0 %1598 }
 0x34c   : > { %v2738_v16 = vpop.permute.xlu1 %1681 }
 0x34d   : > { %v2736_v38 = vpop.permute.xlu0 %1679 }
 0x350   : > { %v2742_v11 = vpop.permute.xlu1 %1596 }
 0x351   : > { %v2740_v14 = vpop.permute.xlu0 %1594 }
 0x354   : > { %v2746_v45 = vpop.permute.xlu1 %1677 }
 0x355   : > { %v2744_v52 = vpop.permute.xlu0 %1675 }
 0x358   : > { %v1739_v19 = vpop.permute.xlu1 %1738 }
 0x359   : > { %v1737_v50 = vpop.permute.xlu0 %1736 }
 0x35c   : > { %v1735_v12 = vpop.permute.xlu1 %1734 }
 0x35d   : > { %v1733_v24 = vpop.permute.xlu0 %1732 }
 0x361   : > { %v1745_v27 = vpop.permute.xlu0 %1744 }
 0x3a0   : > { %v2069_v37 = vpop.f32.mrb[32].mxu0 }
 0x3a1   : > { %v1338_v20 = vpop.f32.mrb[33].mxu0 }
 0x3a2   : > { %v2070_v17 = vpop.f32.mrb[34].mxu0 }
 0x3a3   : > { %v1402_v46 = vpack.c.bf16 %v2070_v17, %v2069_v37  ;;  %v1341_v22 = vpop.f32.mrb[35].mxu0  ;;  %v1747_v37 = vpop.permute.xlu1 %1746 }
 0x3a4   : > { %v1401_v0 = vpack.c.bf16 %v1341_v22, %v1338_v20  ;;  %v1741_v17 = vpop.permute.xlu0 %1740 }
 0x3a6   : > { %2085 = vmatprep.mubr.msk.bf16.mxu1 %vm479_vm0, %v1401_v0 }
 0x3a7   : > { %2086 = vmatmul.mubr.msk.bf16.vlgmr.msra.gmra.mrb[32].mxu1 %vm479_vm0, %v1402_v46  ;;  %v1743_v22 = vpop.permute.xlu1 %1742 }
 0x3a9   : > { %v2073_v28 = vpop.f32.mrb[36].mxu0 }
 0x3aa   : > { %v1354_v63 = vpop.f32.mrb[37].mxu0 }
 0x3ab   : > { %v2074_v32 = vpop.f32.mrb[38].mxu0 }
 0x3ac   : > { %v1404_v2 = vpack.c.bf16 %v2074_v32, %v2073_v28  ;;  %v1357_v33 = vpop.f32.mrb[39].mxu0  ;;  %v1753_v32 = vpop.permute.xlu0 %1752 }
 0x3ad   : > { %v1403_v9 = vpack.c.bf16 %v1357_v33, %v1354_v63 }
 0x3af   : > { %2089 = vmatprep.mubr.msk.bf16.mxu1 %vm479_vm0, %v1403_v9 }
 0x3b0   : > { %2090 = vmatmul.mubr.msk.bf16.gmra.mrb[36].mxu1 %vm479_vm0, %v1404_v2  ;;  %v1755_v2 = vpop.permute.xlu1 %1754  ;;  %v1749_v33 = vpop.permute.xlu0 %1748 }
 0x3b4   : > { %v2077_v35 = vpop.f32.mrb[40].mxu0 }
 0x3b5   : > { %v1370_v39 = vpop.f32.mrb[41].mxu0 }
 0x3b6   : > { %v2078_v13 = vpop.f32.mrb[42].mxu0 }
 0x3b7   : > { %v1406_v44 = vpack.c.bf16 %v2078_v13, %v2077_v35  ;;  %v1373_v47 = vpop.f32.mrb[43].mxu0  ;;  %v1751_v35 = vpop.permute.xlu1 %1750 }
 0x3b8   : > { %v1405_v48 = vpack.c.bf16 %v1373_v47, %v1370_v39  ;;  %v1757_v47 = vpop.permute.xlu0 %1756 }
 0x3ba   : > { %2093 = vmatprep.mubr.msk.bf16.mxu1 %vm479_vm0, %v1405_v48 }
 0x3bb   : > { %2094 = vmatmul.mubr.msk.bf16.gmra.mrb[40].mxu1 %vm479_vm0, %v1406_v44  ;;  %v1759_v48 = vpop.permute.xlu1 %1758 }
 0x3bd   : > { %v2081_v43 = vpop.f32.mrb[44].mxu0 }
 0x3be   : > { %v1386_v51 = vpop.f32.mrb[45].mxu0 }
 0x3bf   : > { %v2082_v57 = vpop.f32.mrb[46].mxu0 }
 0x3c0   : > { %v1408_v41 = vpack.c.bf16 %v2082_v57, %v2081_v43  ;;  %v1389_v54 = vpop.f32.mrb[47].mxu0 }
 0x3c1   : > { %v1407_v4 = vpack.c.bf16 %v1389_v54, %v1386_v51 }
 0x3c3   : > { %2097 = vmatprep.mubr.msk.bf16.mxu1 %vm479_vm0, %v1407_v4  ;;  %v1763_v4 = vpop.permute.xlu1 %1762 }
 0x3c4   : > { %2098 = vmatmul.mubr.msk.bf16.gmra.mrb[44].mxu1 %vm479_vm0, %v1408_v41  ;;  %v1761_v41 = vpop.permute.xlu0 %1760 }
 0x47a   : > { %v2087_v31 = vpop.f32.mrb[32].mxu1 }
 0x47b   : > { %1540 = vst.msk [vmem:[%s2752_s25 + $0x10] sm:$0xff] %vm479_vm0, %v2087_v31  ;;  %v1475_v34 = vpop.f32.mrb[33].mxu1 }
 0x47c   : > { %1621 = vst.msk [vmem:[%s2752_s25 + $0x10] sm:$0xff] %vm1618_vm4, %v1575_v56  ;;  %v2088_v15 = vpop.f32.mrb[34].mxu1 }
 0x47d   : > { %1538 = vst.msk [vmem:[%s2752_s25] sm:$0xff] %vm479_vm0, %v1475_v34  ;;  %1541 = vst.msk [vmem:[%s2752_s25 + $0x18] sm:$0xff] %vm479_vm0, %v2088_v15  ;;  %v1478_v20 = vpop.f32.mrb[35].mxu1 }
 0x47e   : > { %1702 = vst.msk [vmem:[%s2752_s25 + $0x10] sm:$0xff] %vm1699_vm5, %v1656_v55 }
 0x47f   : > { %1619 = vst.msk [vmem:[%s2752_s25] sm:$0xff] %vm1618_vm4, %v1571_v25  ;;  %1622 = vst.msk [vmem:[%s2752_s25 + $0x18] sm:$0xff] %vm1618_vm4, %v1577_v58 }
 0x480   : > { %1783 = vst.msk [vmem:[%s2752_s25 + $0x10] sm:$0xff] %vm1780_vm6, %v1737_v50 }
 0x481   : > { %1700 = vst.msk [vmem:[%s2752_s25] sm:$0xff] %vm1699_vm5, %v1652_v21  ;;  %1703 = vst.msk [vmem:[%s2752_s25 + $0x18] sm:$0xff] %vm1699_vm5, %v1658_v59 }
 0x482   : > { %1539 = vst.msk [vmem:[%s2752_s25 + $0x8] sm:$0xff] %vm479_vm0, %v1478_v20 }
 0x483   : > { %1781 = vst.msk [vmem:[%s2752_s25] sm:$0xff] %vm1780_vm6, %v1733_v24  ;;  %1784 = vst.msk [vmem:[%s2752_s25 + $0x18] sm:$0xff] %vm1780_vm6, %v1739_v19  ;;  %v2091_v46 = vpop.f32.mrb[36].mxu1 }
 0x484   : > { %1620 = vst.msk [vmem:[%s2752_s25 + $0x8] sm:$0xff] %vm1618_vm4, %v1573_v60  ;;  %v1491_v0 = vpop.f32.mrb[37].mxu1 }
 0x485   : > { %1701 = vst.msk [vmem:[%s2752_s25 + $0x8] sm:$0xff] %vm1699_vm5, %v1654_v26  ;;  %v2092_v28 = vpop.f32.mrb[38].mxu1 }
 0x486   : > { %1782 = vst.msk [vmem:[%s2752_s25 + $0x8] sm:$0xff] %vm1780_vm6, %v1735_v12  ;;  %v1494_v63 = vpop.f32.mrb[39].mxu1 }
 0x487   : > { %1544 = vst.msk [vmem:[%s2752_s25 + $0x30] sm:$0xff] %vm479_vm0, %v2091_v46  ;;  %1542 = vst.msk [vmem:[%s2752_s25 + $0x20] sm:$0xff] %vm479_vm0, %v1491_v0 }
 0x488   : > { %1625 = vst.msk [vmem:[%s2752_s25 + $0x30] sm:$0xff] %vm1618_vm4, %v1583_v29  ;;  %1623 = vst.msk [vmem:[%s2752_s25 + $0x20] sm:$0xff] %vm1618_vm4, %v1579_v40 }
 0x489   : > { %1706 = vst.msk [vmem:[%s2752_s25 + $0x30] sm:$0xff] %vm1699_vm5, %v1664_v62  ;;  %1704 = vst.msk [vmem:[%s2752_s25 + $0x20] sm:$0xff] %vm1699_vm5, %v1660_v42 }
 0x48a   : > { %1545 = vst.msk [vmem:[%s2752_s25 + $0x38] sm:$0xff] %vm479_vm0, %v2092_v28  ;;  %1543 = vst.msk [vmem:[%s2752_s25 + $0x28] sm:$0xff] %vm479_vm0, %v1494_v63 }
 0x48b   : > { %1787 = vst.msk [vmem:[%s2752_s25 + $0x30] sm:$0xff] %vm1780_vm6, %v1745_v27  ;;  %1785 = vst.msk [vmem:[%s2752_s25 + $0x20] sm:$0xff] %vm1780_vm6, %v1741_v17 }
 0x48c   : > { %1626 = vst.msk [vmem:[%s2752_s25 + $0x38] sm:$0xff] %vm1618_vm4, %v2708_v61  ;;  %1624 = vst.msk [vmem:[%s2752_s25 + $0x28] sm:$0xff] %vm1618_vm4, %v2712_v6 }
 0x48d   : > { %1707 = vst.msk [vmem:[%s2752_s25 + $0x38] sm:$0xff] %vm1699_vm5, %v2710_v3  ;;  %1705 = vst.msk [vmem:[%s2752_s25 + $0x28] sm:$0xff] %vm1699_vm5, %v2714_v18 }
 0x48e   : > { %1788 = vst.msk [vmem:[%s2752_s25 + $0x38] sm:$0xff] %vm1780_vm6, %v1747_v37  ;;  %1786 = vst.msk [vmem:[%s2752_s25 + $0x28] sm:$0xff] %vm1780_vm6, %v1743_v22  ;;  %v2095_v9 = vpop.f32.mrb[40].mxu1 }
 0x48f   : > { %1548 = vst.msk [vmem:[%s2752_s25 + $0x50] sm:$0xff] %vm479_vm0, %v2095_v9  ;;  %v1507_v39 = vpop.f32.mrb[41].mxu1 }
 0x490   : > { %1629 = vst.msk [vmem:[%s2752_s25 + $0x50] sm:$0xff] %vm1618_vm4, %v2716_v36  ;;  %v2096_v13 = vpop.f32.mrb[42].mxu1 }
 0x491   : > { %1546 = vst.msk [vmem:[%s2752_s25 + $0x40] sm:$0xff] %vm479_vm0, %v1507_v39  ;;  %1549 = vst.msk [vmem:[%s2752_s25 + $0x58] sm:$0xff] %vm479_vm0, %v2096_v13  ;;  %v1510_v44 = vpop.f32.mrb[43].mxu1 }
 0x492   : > { %1710 = vst.msk [vmem:[%s2752_s25 + $0x50] sm:$0xff] %vm1699_vm5, %v2720_v8 }
 0x493   : > { %1627 = vst.msk [vmem:[%s2752_s25 + $0x40] sm:$0xff] %vm1618_vm4, %v2724_v23  ;;  %1630 = vst.msk [vmem:[%s2752_s25 + $0x58] sm:$0xff] %vm1618_vm4, %v2718_v7 }
 0x494   : > { %1791 = vst.msk [vmem:[%s2752_s25 + $0x50] sm:$0xff] %vm1780_vm6, %v1753_v32 }
 0x495   : > { %1708 = vst.msk [vmem:[%s2752_s25 + $0x40] sm:$0xff] %vm1699_vm5, %v2728_v53  ;;  %1711 = vst.msk [vmem:[%s2752_s25 + $0x58] sm:$0xff] %vm1699_vm5, %v2722_v10 }
 0x496   : > { %1547 = vst.msk [vmem:[%s2752_s25 + $0x48] sm:$0xff] %vm479_vm0, %v1510_v44 }
 0x497   : > { %1789 = vst.msk [vmem:[%s2752_s25 + $0x40] sm:$0xff] %vm1780_vm6, %v1749_v33  ;;  %1792 = vst.msk [vmem:[%s2752_s25 + $0x58] sm:$0xff] %vm1780_vm6, %v1755_v2  ;;  %v2099_v43 = vpop.f32.mrb[44].mxu1 }
 0x498   : > { %1628 = vst.msk [vmem:[%s2752_s25 + $0x48] sm:$0xff] %vm1618_vm4, %v2726_v30  ;;  %v1523_v51 = vpop.f32.mrb[45].mxu1 }
 0x499   : > { %1709 = vst.msk [vmem:[%s2752_s25 + $0x48] sm:$0xff] %vm1699_vm5, %v2730_v1  ;;  %v2100_v57 = vpop.f32.mrb[46].mxu1 }
 0x49a   : > { %1790 = vst.msk [vmem:[%s2752_s25 + $0x48] sm:$0xff] %vm1780_vm6, %v1751_v35  ;;  %v1526_v54 = vpop.f32.mrb[47].mxu1 }
 0x49b   : > { %1552 = vst.msk [vmem:[%s2752_s25 + $0x70] sm:$0xff] %vm479_vm0, %v2099_v43  ;;  %1550 = vst.msk [vmem:[%s2752_s25 + $0x60] sm:$0xff] %vm479_vm0, %v1523_v51 }
 0x49c   : > { %1633 = vst.msk [vmem:[%s2752_s25 + $0x70] sm:$0xff] %vm1618_vm4, %v2732_v5  ;;  %1631 = vst.msk [vmem:[%s2752_s25 + $0x60] sm:$0xff] %vm1618_vm4, %v2740_v14 }
 0x49d   : > { %1714 = vst.msk [vmem:[%s2752_s25 + $0x70] sm:$0xff] %vm1699_vm5, %v2736_v38  ;;  %1712 = vst.msk [vmem:[%s2752_s25 + $0x60] sm:$0xff] %vm1699_vm5, %v2744_v52 }
 0x49e   : > { %1553 = vst.msk [vmem:[%s2752_s25 + $0x78] sm:$0xff] %vm479_vm0, %v2100_v57  ;;  %1551 = vst.msk [vmem:[%s2752_s25 + $0x68] sm:$0xff] %vm479_vm0, %v1526_v54 }
 0x49f   : > { %1795 = vst.msk [vmem:[%s2752_s25 + $0x70] sm:$0xff] %vm1780_vm6, %v1761_v41  ;;  %1793 = vst.msk [vmem:[%s2752_s25 + $0x60] sm:$0xff] %vm1780_vm6, %v1757_v47 }
 0x4a0   : > { %1634 = vst.msk [vmem:[%s2752_s25 + $0x78] sm:$0xff] %vm1618_vm4, %v2734_v49  ;;  %1632 = vst.msk [vmem:[%s2752_s25 + $0x68] sm:$0xff] %vm1618_vm4, %v2742_v11 }
 0x4a1   : > { %1715 = vst.msk [vmem:[%s2752_s25 + $0x78] sm:$0xff] %vm1699_vm5, %v2738_v16  ;;  %1713 = vst.msk [vmem:[%s2752_s25 + $0x68] sm:$0xff] %vm1699_vm5, %v2746_v45 }
 0x4a2   : > { %1796 = vst.msk [vmem:[%s2752_s25 + $0x78] sm:$0xff] %vm1780_vm6, %v1763_v4  ;;  %1794 = vst.msk [vmem:[%s2752_s25 + $0x68] sm:$0xff] %vm1780_vm6, %v1759_v48 }
 0x4a3 PF: > { %s22_s21 = sadd.s32 1, %s2253_s21  }
 0x4a4   : > { %p19_p4 = scmp.ge.s32.totalorder %s22_s21, 4  }
 0x4a6   :  { %21 = sbr.rel (!%p19_p4) target bundleno = 1 (0x1), region = 101 }

</bundles_post_ra>
